<compile_context>
chip_gen: v5e
topology: v5e:2x2
jax: 0.10.0
libtpu: 0.0.40
codegen_flags: <defaults>
</compile_context>

<pallas_src>
import jax
import jax.numpy as jnp
from jax.experimental import pallas as pl
from jax.experimental.pallas import tpu as pltpu


def _round_up(x, m):
    return ((x + m - 1) // m) * m


def adapter_tc_kernel(x_ref, w1_ref, w2_ref, o_ref):
    # Hot path: two MXU matmuls fused with ReLU, all resident in VMEM.
    # The x tile is cast to the weight/compute dtype in-VMEM (VPU cast, free
    # relative to the HBM stream), so HBM only ever sees x's original dtype.
    x = x_ref[...].astype(w1_ref.dtype)
    h = jnp.dot(x, w1_ref[...], preferred_element_type=jnp.float32)
    h = jnp.maximum(h, 0.0)
    y = jnp.dot(h.astype(w2_ref.dtype), w2_ref[...],
                preferred_element_type=jnp.float32)
    o_ref[...] = jnp.maximum(y, 0.0).astype(o_ref.dtype)


def adapter_tc(x, w1, w2, *, tm=None, compute_dtype=None,
               min_pallas_elems=1 << 17):
    """relu(relu(x @ w1) @ w2).  x: (..., C); w1: (C, C//r); w2: (C//r, C)."""
    orig_shape = x.shape
    orig_dtype = x.dtype
    C = orig_shape[-1]
    Ci, H = w1.shape
    assert Ci == C and w2.shape == (H, C), "weights must be (C, C//r), (C//r, C)"

    x2 = x.reshape(-1, C)
    N = x2.shape[0]

    # Tiny / mid-size adapters: launch + per-step overhead exceeds the DMA
    # time; let XLA fuse the two matmuls + ReLUs instead.
    if N * C < min_pallas_elems:
        h = jnp.maximum(x2 @ w1, 0.0)
        y = jnp.maximum(h @ w2, 0.0)
        return y.astype(orig_dtype).reshape(orig_shape)

    # compute_dtype only affects the (tiny) weights and the in-kernel matmul
    # inputs; x is NOT cast in the wrapper (that would add a full extra HBM
    # read+write pass over x, a net loss on v5e unless x is already 16-bit).
    cdt = jnp.dtype(compute_dtype) if compute_dtype is not None else jnp.dtype(orig_dtype)
    w1c = w1.astype(cdt)
    w2c = w2.astype(cdt)

    in_itemsize = x2.dtype.itemsize
    out_itemsize = jnp.dtype(orig_dtype).itemsize
    # Sublane packing: 8 rows for 32-bit, 16 for 16-bit, 32 for 8-bit dtypes.
    row_align = max(8, 8 * (4 // max(1, in_itemsize)))

    # Big row tiles: ~0.35 us fixed cost per grid step, so target >= ~1 MiB of
    # x+out DMA per step (>= 85% of HBM roofline in the tile-size sweep).
    if tm is None:
        tm = 4096
    tm = min(tm, _round_up(N, row_align))

    # v7x shards the "parallel" axis across 2 TensorCores: aim for >= 4 grid
    # steps (>= 2 per core) whenever each step still moves plenty of rows.
    # Costs nothing on 1-TC chips since the per-step DMA stays large.
    target_steps = 4
    if N >= target_steps * 1024 and pl.cdiv(N, tm) < target_steps:
        tm = _round_up(pl.cdiv(N, target_steps), row_align)
    tm = max(row_align, _round_up(tm, row_align))

    # Per-step working set: double-buffered x/out tiles, resident weights
    # (double-buffered but tiny), f32 intermediates.
    def vmem_estimate(tm_):
        e = 2 * tm_ * C * (in_itemsize + out_itemsize)     # x + out tiles, 2 bufs each
        e += 2 * 2 * C * H * cdt.itemsize                  # W1 + W2, 2 bufs each
        e += tm_ * (H + C) * 4                             # f32 intermediates
        return e

    # Budget against this chip's real VMEM (v7x: 64 MiB, v5e/v6e: 128 MiB).
    try:
        vmem_cap = int(pltpu.get_tpu_info().vmem_capacity_bytes)
    except Exception:
        vmem_cap = 64 << 20                                # assume smallest generation
    vmem_budget = int(vmem_cap * 0.7)
    while tm > row_align and vmem_estimate(tm) > vmem_budget:
        tm = max(row_align, _round_up(tm // 2, row_align))

    # Scoped-VMEM limit: working set + margin, not a generation-blind 32-48 MiB
    # floor (leaves headroom for surrounding fusions on v7x's 64 MiB VMEM).
    vmem_limit = int(min(vmem_cap - (8 << 20),
                         max(8 << 20, 2 * vmem_estimate(tm) + (2 << 20))))

    grid = (pl.cdiv(N, tm),)

    cost = pl.CostEstimate(
        flops=4 * N * C * H,
        transcendentals=0,
        bytes_accessed=N * C * (in_itemsize + out_itemsize) + 2 * C * H * cdt.itemsize,
    )

    grid_spec = pltpu.PrefetchScalarGridSpec(
        num_scalar_prefetch=0,
        grid=grid,
        in_specs=[
            pl.BlockSpec((tm, C), lambda i: (i, 0)),    # x row tile
            pl.BlockSpec((C, H), lambda i: (0, 0)),     # W1 (resident, constant map)
            pl.BlockSpec((H, C), lambda i: (0, 0)),     # W2 (resident, constant map)
        ],
        out_specs=pl.BlockSpec((tm, C), lambda i: (i, 0)),
    )

    out = pl.pallas_call(
        adapter_tc_kernel,
        out_shape=jax.ShapeDtypeStruct((N, C), orig_dtype),
        grid_spec=grid_spec,
        compiler_params=pltpu.CompilerParams(
            dimension_semantics=("parallel",),
            vmem_limit_bytes=vmem_limit,
        ),
        cost_estimate=cost,
    )(x2, w1c, w2c)

    return out.reshape(orig_shape)


def reference(x, w1, w2):
    h = jnp.maximum(x @ w1, 0.0)
    return jnp.maximum(h @ w2, 0.0)


if __name__ == "__main__":
    # Adapter_tc(c_in=64, reduction=4): hidden = 16
    C, R = 64, 4
    H = C // R

    key = jax.random.PRNGKey(0)
    kx, k1, k2, kx2, kx3 = jax.random.split(key, 5)

    # PyTorch nn.Linear stores weight as (out, in); kernel takes (in, out).
    b1, b2 = 1.0 / C ** 0.5, 1.0 / H ** 0.5
    w1_pt = jax.random.uniform(k1, (H, C), jnp.float32, -b1, b1)
    w2_pt = jax.random.uniform(k2, (C, H), jnp.float32, -b2, b2)
    w1 = w1_pt.T   # (C, H)
    w2 = w2_pt.T   # (H, C)

    # 1) Pallas path, f32: multi-step grid with a partial last row tile.
    N = 5000
    x = jax.random.normal(kx, (N, C), dtype=jnp.float32)
    out = jax.block_until_ready(adapter_tc(x, w1, w2))
    ref = reference(x, w1, w2)
    assert out.shape == (N, C)
    assert jnp.allclose(out, ref, atol=1e-4, rtol=1e-4), "f32 Pallas path mismatch"

    # 2) Pallas path with leading batch dims (flattened to rows internally).
    xb = jax.random.normal(kx3, (2, 1024, C), dtype=jnp.float32)
    out_b = jax.block_until_ready(adapter_tc(xb, w1, w2))
    ref_b = reference(xb.reshape(-1, C), w1, w2).reshape(2, 1024, C)
    assert out_b.shape == (2, 1024, C)
    assert jnp.allclose(out_b, ref_b, atol=1e-4, rtol=1e-4), "batched Pallas mismatch"

    # 3) bf16 compute (f32 accumulation); x stays f32 in HBM, cast in-kernel.
    #    The looser tolerance is the expected bf16 rounding of weights and of
    #    the intermediate h before the second matmul, not a bug.
    out_bf16 = jax.block_until_ready(adapter_tc(x, w1, w2, compute_dtype=jnp.bfloat16))
    assert out_bf16.shape == (N, C)
    assert jnp.allclose(out_bf16, ref, atol=1e-1, rtol=1e-1), "bf16 Pallas path mismatch"

    # 4) Tiny adapter (the shipped toy shape) routes to the plain-XLA fallback.
    x_small = jax.random.normal(kx2, (8, C), dtype=jnp.float32)
    out_small = jax.block_until_ready(adapter_tc(x_small, w1, w2))
    assert out_small.shape == (8, C)
    assert jnp.allclose(out_small, reference(x_small, w1, w2),
                        atol=1e-5, rtol=1e-5), "XLA fallback mismatch"

    print("KERNEL_OK")
</pallas_src>

<mosaic_0001>
module attributes {stable_mosaic.version = 11 : i64} {
  func.func @adapter_tc_kernel(%arg0: i32, %arg1: memref<1256x64xf32, #tpu.memory_space<vmem>>, %arg2: memref<64x16xf32, #tpu.memory_space<vmem>>, %arg3: memref<16x64xf32, #tpu.memory_space<vmem>>, %arg4: memref<1256x64xf32, #tpu.memory_space<vmem>>) attributes {dimension_semantics = [#tpu.dimension_semantics<parallel>], iteration_bounds = array<i64: 4>, scalar_prefetch = 0 : i64, scratch_operands = 0 : i64, tpu.core_type = #tpu.core_type<tc>, window_params = [{transform_indices = @transform_0, window_bounds = array<i64: 1256, 64>}, {pipeline_mode = #tpu.pipeline_mode<synchronous>, transform_indices = @transform_1, window_bounds = array<i64: 64, 16>}, {pipeline_mode = #tpu.pipeline_mode<synchronous>, transform_indices = @transform_2, window_bounds = array<i64: 16, 64>}, {transform_indices = @transform_3, window_bounds = array<i64: 1256, 64>}]} {
    %c0 = arith.constant 0 : index
    %c0_0 = arith.constant 0 : index
    %0 = vector.load %arg1[%c0, %c0_0] : memref<1256x64xf32, #tpu.memory_space<vmem>>, vector<1256x64xf32>
    %c0_1 = arith.constant 0 : index
    %c0_2 = arith.constant 0 : index
    %1 = vector.load %arg2[%c0_1, %c0_2] : memref<64x16xf32, #tpu.memory_space<vmem>>, vector<64x16xf32>
    %cst = arith.constant dense<0.000000e+00> : vector<1256x16xf32>
    %2 = tpu.matmul %0, %1, %cst {dimension_numbers = #tpu.dot_dimension_numbers<[1], [0], [0], [1], [0, 0, 1, 1], [], []>} : vector<1256x64xf32>, vector<64x16xf32>, vector<1256x16xf32> -> vector<1256x16xf32>
    %cst_3 = arith.constant 0.000000e+00 : f32
    %3 = vector.broadcast %cst_3 : f32 to vector<1256x16xf32>
    %4 = arith.maximumf %2, %3 : vector<1256x16xf32>
    %c0_4 = arith.constant 0 : index
    %c0_5 = arith.constant 0 : index
    %5 = vector.load %arg3[%c0_4, %c0_5] : memref<16x64xf32, #tpu.memory_space<vmem>>, vector<16x64xf32>
    %cst_6 = arith.constant dense<0.000000e+00> : vector<1256x64xf32>
    %6 = tpu.matmul %4, %5, %cst_6 {dimension_numbers = #tpu.dot_dimension_numbers<[1], [0], [0], [1], [0, 0, 1, 1], [], []>} : vector<1256x16xf32>, vector<16x64xf32>, vector<1256x64xf32> -> vector<1256x64xf32>
    %cst_7 = arith.constant 0.000000e+00 : f32
    %7 = vector.broadcast %cst_7 : f32 to vector<1256x64xf32>
    %8 = arith.maximumf %6, %7 : vector<1256x64xf32>
    %c0_8 = arith.constant 0 : index
    %c0_9 = arith.constant 0 : index
    %9 = vector.load %arg4[%c0_8, %c0_9] : memref<1256x64xf32, #tpu.memory_space<vmem>>, vector<1256x64xf32>
    tpu.vector_store %arg4[%c0_8, %c0_9], %8 {strides = array<i32>} : memref<1256x64xf32, #tpu.memory_space<vmem>>, vector<1256x64xf32>,
    return
  }
  func.func @transform_0(%arg0: i32) -> (i32, i32) {
    %c0_i32 = arith.constant 0 : i32
    %c0_i32_0 = arith.constant 0 : i32
    return %arg0, %c0_i32 : i32, i32
  }
  func.func @transform_1(%arg0: i32) -> (i32, i32) {
    %c0_i32 = arith.constant 0 : i32
    %c0_i32_0 = arith.constant 0 : i32
    %c0_i32_1 = arith.constant 0 : i32
    return %c0_i32, %c0_i32_0 : i32, i32
  }
  func.func @transform_2(%arg0: i32) -> (i32, i32) {
    %c0_i32 = arith.constant 0 : i32
    %c0_i32_0 = arith.constant 0 : i32
    %c0_i32_1 = arith.constant 0 : i32
    return %c0_i32, %c0_i32_0 : i32, i32
  }
  func.func @transform_3(%arg0: i32) -> (i32, i32) {
    %c0_i32 = arith.constant 0 : i32
    %c0_i32_0 = arith.constant 0 : i32
    return %arg0, %c0_i32 : i32, i32
  }
}

</mosaic_0001>

<bundles_post_ra>
// kernel: tpu_custom_call.1
= control target key start
LH: loop header
LB: loop body
LE: loop exit
PB: predicated region body
PF: predicated region fallthrough
CT: control target
= control target key end

     0   :  { %s3634_s12 = smov 0   ;;  %s3636_s13 = smov 0   ;;  %s4639_s0 = inlined_call_operand.vmem [shape: f32[5000,64], index: 0, kind: input, shape index: {}]   ;;  %s4640_s1 = inlined_call_operand.vmem [shape: f32[64,16], index: 1, kind: input, shape index: {}]   ;;  %s4641_s2 = inlined_call_operand.vmem [shape: f32[16,64], index: 2, kind: input, shape index: {}]   ;;  %s4642_s3 = inlined_call_operand.vmem [shape: f32[5000,64], index: 3, kind: output, shape index: {}]  }
   0x1   :  { %s3638_s14 = smov 0  }
   0x2 LB: > { %s3647_s15 = sadd.s32 4294967295, %s3580_s14   ;;  %s3649_s16 = sadd.s32 1, %s3580_s14   ;;  %s3580_s14 = sphi %s3638_s14, %s4651_s14   ;;  %s3576_s13 = sphi %s3636_s13, %s4650_s13   ;;  %s3572_s12 = sphi %s3634_s12, %s4649_s12  }
   0x3   : > { %s85_s17 = ssub.s32 %s3580_s14, %s3649_s16  ;;  %s88_s18 = sadd.s32 1, %s3576_s13 }
   0x4   : > { %p86_p0 = scmp.eq.s32.totalorder %s85_s17, 0  ;;  %p98_p1 = scmp.ne.s32.totalorder %s3576_s13, %s3572_s12 }
   0x5   : > { %p99_p2 = scmp.eq.s32.totalorder %s3647_s15, 3  ;;  %p3093_p3 = scmp.ge.s32.totalorder %s3580_s14, 1 }
   0x6   : > { %s3657_s19 = scalar_select %p86_p0, %s3576_s13, %s88_s18  }
   0x7   : > { %p3659_p4 = por %p99_p2, %p98_p1  ;;  %p146_p5 = scmp.lt.s32.totalorder %s3580_s14, 5 }
   0x9   : > { %p147_p6 = pnand %p3093_p3, %p146_p5 }
   0xa   : > { %s3670_s25 = smul.u32 (!%p147_p6), 157, %s3647_s15  ;;  %s170_s27 = sand.u32 (!%p147_p6), 1, %s3572_s12  }
   0xb   : > { %150 = sbr.rel (%p147_p6) target bundleno = 989 (0x3dd), region = 32 }
   0xc   : > { %p178_p7 = scmp.lt.s32.totalorder (!%p147_p6), %s3670_s25, 624  ;;  %s3437_s28 = smul.u32 (!%p147_p6), 1256, %s170_s27 }
   0xe   : > { %s3870_s12 = scalar_lea.vmem (!%p147_p6), [#allocation2], %s3437_s28  }
  0x10   : > { %v356_v0 = vld [vmem:[%s4640_s1 + $0x38] sm:$0xff]  ;;  %v355_v1 = vld [vmem:[%s4640_s1 + $0x30] sm:$0xff]  ;;  %v354_v2 = vld [vmem:[%s4640_s1 + $0x28] sm:$0xff]  ;;  %s179_s30 = scalar_select %p178_p7, %s3670_s25, 624  ;;  %vm357_vm0 = vcmask 523264   ;;  %vm1476_vm1 = vcmask 130048  }
  0x11   : > { %837 = vmatpush.msra.mxu0 %v356_v0  ;;  %3427 = vmatpush.msra.mxu2 %v356_v0  ;;  %v353_v3 = vld [vmem:[%s4640_s1 + $0x20] sm:$0xff]  ;;  %v352_v4 = vld [vmem:[%s4640_s1 + $0x18] sm:$0xff]  ;;  %v351_v5 = vld [vmem:[%s4640_s1 + $0x10] sm:$0xff]  ;;  %s2758_s29 = ssub.s32 (%p3659_p4), 625, %s3670_s25 }
  0x12   : > { %s3094_s6 = sshll.u32 %s179_s30, 3  ;;  %v350_v6 = vld [vmem:[%s4640_s1 + $0x8] sm:$0xff]  ;;  %v349_v7 = vld [vmem:[%s4640_s1] sm:$0xff]  ;;  %s3424_s30 = smul.u32 (%p3659_p4), 1256, %s3647_s15 }
  0x13   : > { %838 = vmatpush.msra.mxu0 %v355_v1  ;;  %3428 = vmatpush.msra.mxu2 %v355_v1  ;;  %s3692_s17 = scalar_lea.vmem %s4639_s0, %s3094_s6  ;;  %v1475_v32 = vld [vmem:[%s4641_s2 + $0x8] sm:$0xff]  ;;  %v1474_v35 = vld [vmem:[%s4641_s2] sm:$0xff]  ;;  %p2759_p8 = scmp.lt.s32.totalorder (%p3659_p4), %s2758_s29, 157 }
  0x14   : > { %v192_v8 = vld [vmem:[%s3692_s17] sm:$0xff]  ;;  %v270_v9 = vld [vmem:[%s3692_s17 + $0x270] sm:$0xff]  ;;  %v193_v10 = vld [vmem:[%s3692_s17 + $0x8] sm:$0xff]  ;;  %1962 = vmatpush.msra.mxu1 %v1475_v32  ;;  %3435 = vmatpush.msra.mxu3 %v1475_v32  ;;  %s4504_s6 = scalar_lea.vmem (%p3659_p4), %s4642_s3, %s3424_s30  }
  0x15   : > { %839 = vmatpush.msra.mxu0 %v354_v2  ;;  %3429 = vmatpush.msra.mxu2 %v354_v2  ;;  %v271_v11 = vld [vmem:[%s3692_s17 + $0x278] sm:$0xff]  ;;  %v194_v12 = vld [vmem:[%s3692_s17 + $0x10] sm:$0xff]  ;;  %v272_v13 = vld [vmem:[%s3692_s17 + $0x280] sm:$0xff] }
  0x16   : > { %v195_v14 = vld [vmem:[%s3692_s17 + $0x18] sm:$0xff]  ;;  %v273_v15 = vld [vmem:[%s3692_s17 + $0x288] sm:$0xff]  ;;  %v196_v16 = vld [vmem:[%s3692_s17 + $0x20] sm:$0xff]  ;;  %1963 = vmatpush.msra.mxu1 %v1474_v35  ;;  %3436 = vmatpush.msra.mxu3 %v1474_v35 }
  0x17   : > { %840 = vmatpush.msra.mxu0 %v353_v3  ;;  %3430 = vmatpush.msra.mxu2 %v353_v3  ;;  %v274_v17 = vld [vmem:[%s3692_s17 + $0x290] sm:$0xff]  ;;  %v197_v18 = vld [vmem:[%s3692_s17 + $0x28] sm:$0xff]  ;;  %v275_v19 = vld [vmem:[%s3692_s17 + $0x298] sm:$0xff] }
  0x18   : > { %v198_v20 = vld [vmem:[%s3692_s17 + $0x30] sm:$0xff]  ;;  %v276_v21 = vld [vmem:[%s3692_s17 + $0x2a0] sm:$0xff]  ;;  %v199_v22 = vld [vmem:[%s3692_s17 + $0x38] sm:$0xff] }
  0x19   : > { %841 = vmatpush.msra.mxu0 %v352_v4  ;;  %3431 = vmatpush.msra.mxu2 %v352_v4  ;;  %v277_v23 = vld [vmem:[%s3692_s17 + $0x2a8] sm:$0xff]  ;;  %v200_v24 = vld [vmem:[%s3692_s17 + $0x40] sm:$0xff]  ;;  %v278_v25 = vld [vmem:[%s3692_s17 + $0x2b0] sm:$0xff] }
  0x1a   : > { %v201_v26 = vld [vmem:[%s3692_s17 + $0x48] sm:$0xff]  ;;  %v279_v27 = vld [vmem:[%s3692_s17 + $0x2b8] sm:$0xff]  ;;  %v202_v28 = vld [vmem:[%s3692_s17 + $0x50] sm:$0xff] }
  0x1b   : > { %842 = vmatpush.msra.mxu0 %v351_v5  ;;  %3432 = vmatpush.msra.mxu2 %v351_v5  ;;  %v280_v29 = vld [vmem:[%s3692_s17 + $0x2c0] sm:$0xff]  ;;  %v203_v30 = vld [vmem:[%s3692_s17 + $0x58] sm:$0xff]  ;;  %v281_v31 = vld [vmem:[%s3692_s17 + $0x2c8] sm:$0xff] }
  0x1c   : > { %v204_v33 = vld [vmem:[%s3692_s17 + $0x60] sm:$0xff]  ;;  %v282_v34 = vld [vmem:[%s3692_s17 + $0x2d0] sm:$0xff]  ;;  %v205_v36 = vld [vmem:[%s3692_s17 + $0x68] sm:$0xff] }
  0x1d   : > { %843 = vmatpush.msra.mxu0 %v350_v6  ;;  %3433 = vmatpush.msra.mxu2 %v350_v6  ;;  %v283_v37 = vld [vmem:[%s3692_s17 + $0x2d8] sm:$0xff]  ;;  %v206_v38 = vld [vmem:[%s3692_s17 + $0x70] sm:$0xff]  ;;  %v284_v39 = vld [vmem:[%s3692_s17 + $0x2e0] sm:$0xff] }
  0x1e   : > { %v207_v40 = vld [vmem:[%s3692_s17 + $0x78] sm:$0xff]  ;;  %v285_v41 = vld [vmem:[%s3692_s17 + $0x2e8] sm:$0xff]  ;;  %v208_v43 = vld [vmem:[%s3692_s17 + $0x80] sm:$0xff] }
  0x1f   : > { %844 = vmatpush.msra.mxu0 %v349_v7  ;;  %3434 = vmatpush.msra.mxu2 %v349_v7  ;;  %v286_v44 = vld [vmem:[%s3692_s17 + $0x2f0] sm:$0xff]  ;;  %v209_v48 = vld [vmem:[%s3692_s17 + $0x88] sm:$0xff]  ;;  %v287_v49 = vld [vmem:[%s3692_s17 + $0x2f8] sm:$0xff] }
  0x20   : > { %3095 = vmatmul.msk.f32.vlgmr.msra.gmra.mxu0 %vm357_vm0, %v192_v8  ;;  %3173 = vmatmul.msk.f32.vlgmr.msra.gmra.mxu2 %vm357_vm0, %v270_v9  ;;  %v210_v53 = vld [vmem:[%s3692_s17 + $0x90] sm:$0xff]  ;;  %v288_v54 = vld [vmem:[%s3692_s17 + $0x300] sm:$0xff]  ;;  %v211_v59 = vld [vmem:[%s3692_s17 + $0x98] sm:$0xff] }
  0x21   : > { %v289_v60 = vld [vmem:[%s3692_s17 + $0x308] sm:$0xff]  ;;  %v212_v1 = vld [vmem:[%s3692_s17 + $0xa0] sm:$0xff]  ;;  %v290_v2 = vld [vmem:[%s3692_s17 + $0x310] sm:$0xff] }
  0x22   : > { %v213_v7 = vld [vmem:[%s3692_s17 + $0xa8] sm:$0xff]  ;;  %v291_v8 = vld [vmem:[%s3692_s17 + $0x318] sm:$0xff] }
  0x23   : > { %v295_v32 = vld [vmem:[%s3692_s17 + $0x338] sm:$0xff] }
  0x28   : > { %3096 = vmatmul.msk.f32.gmra.mxu0 %vm357_vm0, %v193_v10  ;;  %3174 = vmatmul.msk.f32.gmra.mxu2 %vm357_vm0, %v271_v11 }
  0x30   : > { %3097 = vmatmul.msk.f32.gmra.mxu0 %vm357_vm0, %v194_v12  ;;  %3175 = vmatmul.msk.f32.gmra.mxu2 %vm357_vm0, %v272_v13  ;;  %v214_v13 = vld [vmem:[%s3692_s17 + $0xb0] sm:$0xff] }
  0x38   : > { %3098 = vmatmul.msk.f32.gmra.mxu0 %vm357_vm0, %v195_v14  ;;  %3176 = vmatmul.msk.f32.gmra.mxu2 %vm357_vm0, %v273_v15  ;;  %v292_v14 = vld [vmem:[%s3692_s17 + $0x320] sm:$0xff] }
  0x40   : > { %3099 = vmatmul.msk.f32.gmra.mxu0 %vm357_vm0, %v196_v16  ;;  %3177 = vmatmul.msk.f32.gmra.mxu2 %vm357_vm0, %v274_v17 }
  0x48   : > { %3100 = vmatmul.msk.f32.gmra.mxu0 %vm357_vm0, %v197_v18  ;;  %3178 = vmatmul.msk.f32.gmra.mxu2 %vm357_vm0, %v275_v19  ;;  %v215_v19 = vld [vmem:[%s3692_s17 + $0xb8] sm:$0xff] }
  0x50   : > { %3101 = vmatmul.msk.f32.gmra.mxu0 %vm357_vm0, %v198_v20  ;;  %3179 = vmatmul.msk.f32.gmra.mxu2 %vm357_vm0, %v276_v21  ;;  %v293_v20 = vld [vmem:[%s3692_s17 + $0x328] sm:$0xff] }
  0x58   : > { %3102 = vmatmul.msk.f32.gmra.mxu0 %vm357_vm0, %v199_v22  ;;  %3180 = vmatmul.msk.f32.gmra.mxu2 %vm357_vm0, %v277_v23 }
  0x60   : > { %3103 = vmatmul.msk.f32.gmra.mxu0 %vm357_vm0, %v200_v24  ;;  %3181 = vmatmul.msk.f32.gmra.mxu2 %vm357_vm0, %v278_v25  ;;  %v216_v25 = vld [vmem:[%s3692_s17 + $0xc0] sm:$0xff] }
  0x68   : > { %3104 = vmatmul.msk.f32.gmra.mxu0 %vm357_vm0, %v201_v26  ;;  %3182 = vmatmul.msk.f32.gmra.mxu2 %vm357_vm0, %v279_v27  ;;  %v294_v26 = vld [vmem:[%s3692_s17 + $0x330] sm:$0xff] }
  0x70   : > { %3105 = vmatmul.msk.f32.gmra.mxu0 %vm357_vm0, %v202_v28  ;;  %3183 = vmatmul.msk.f32.gmra.mxu2 %vm357_vm0, %v280_v29 }
  0x78   : > { %3106 = vmatmul.msk.f32.gmra.mxu0 %vm357_vm0, %v203_v30  ;;  %3184 = vmatmul.msk.f32.gmra.mxu2 %vm357_vm0, %v281_v31  ;;  %v217_v31 = vld [vmem:[%s3692_s17 + $0xc8] sm:$0xff] }
  0x80   : > { %3107 = vmatmul.msk.f32.gmra.mxu0 %vm357_vm0, %v204_v33  ;;  %3185 = vmatmul.msk.f32.gmra.mxu2 %vm357_vm0, %v282_v34 }
  0x88   : > { %3108 = vmatmul.msk.f32.gmra.mxu0 %vm357_vm0, %v205_v36  ;;  %3186 = vmatmul.msk.f32.gmra.mxu2 %vm357_vm0, %v283_v37  ;;  %v218_v37 = vld [vmem:[%s3692_s17 + $0xd0] sm:$0xff] }
  0x90   : > { %3109 = vmatmul.msk.f32.gmra.mxu0 %vm357_vm0, %v206_v38  ;;  %3187 = vmatmul.msk.f32.gmra.mxu2 %vm357_vm0, %v284_v39  ;;  %v296_v38 = vld [vmem:[%s3692_s17 + $0x340] sm:$0xff] }
  0x98   : > { %3110 = vmatmul.msk.f32.gmra.mxu0 %vm357_vm0, %v207_v40  ;;  %3188 = vmatmul.msk.f32.gmra.mxu2 %vm357_vm0, %v285_v41 }
  0x9d   : > { %v846_v42 = vpop.f32.mrf.mxu0 }
  0x9e   : > { %v1317_v45 = vmax.f32 %v846_v42, 0.0 }
  0xa0   : > { %3111 = vmatmul.msk.f32.gmra.mxu0 %vm357_vm0, %v208_v43  ;;  %3189 = vmatmul.msk.f32.gmra.mxu2 %vm357_vm0, %v286_v44  ;;  %v219_v43 = vld [vmem:[%s3692_s17 + $0xd8] sm:$0xff]  ;;  %v297_v44 = vld [vmem:[%s3692_s17 + $0x348] sm:$0xff] }
  0xa1   : > { %3252 = vmatmul.msk.f32.vlgmr.msra.gmra.mxu1 %vm1476_vm1, %v1317_v45 }
  0xa3   : > { %v3772_v46 = vpop.f32.mrf.mxu2 }
  0xa5   : > { %v849_v47 = vpop.f32.mrf.mxu0 }
  0xa6   : > { %v1318_v50 = vmax.f32 %v849_v47, 0.0 }
  0xa8   : > { %3112 = vmatmul.msk.f32.gmra.mxu0 %vm357_vm0, %v209_v48  ;;  %3190 = vmatmul.msk.f32.gmra.mxu2 %vm357_vm0, %v287_v49 }
  0xa9   : > { %3253 = vmatmul.msk.f32.gmra.mxu1 %vm1476_vm1, %v1318_v50  ;;  %v220_v50 = vld [vmem:[%s3692_s17 + $0xe0] sm:$0xff] }
  0xab   : > { %v3779_v51 = vpop.f32.mrf.mxu2 }
  0xad   : > { %v852_v52 = vpop.f32.mrf.mxu0 }
  0xae   : > { %v1319_v55 = vmax.f32 %v852_v52, 0.0  ;;  %v298_v52 = vld [vmem:[%s3692_s17 + $0x350] sm:$0xff] }
  0xb0   : > { %3113 = vmatmul.msk.f32.gmra.mxu0 %vm357_vm0, %v210_v53  ;;  %3191 = vmatmul.msk.f32.gmra.mxu2 %vm357_vm0, %v288_v54 }
  0xb1   : > { %3254 = vmatmul.msk.f32.gmra.mxu1 %vm1476_vm1, %v1319_v55 }
  0xb3   : > { %v1086_v56 = vpop.f32.mrf.mxu2 }
  0xb4   : > { %v1397_v57 = vmax.f32 %v1086_v56, 0.0 }
  0xb5   : > { %v855_v58 = vpop.f32.mrf.mxu0 }
  0xb6   : > { %v1320_v61 = vmax.f32 %v855_v58, 0.0  ;;  %3332 = vmatmul.msk.f32.vlgmr.msra.gmra.mxu3 %vm1476_vm1, %v1397_v57  ;;  %v221_v57 = vld [vmem:[%s3692_s17 + $0xe8] sm:$0xff]  ;;  %v299_v58 = vld [vmem:[%s3692_s17 + $0x358] sm:$0xff] }
  0xb8   : > { %3114 = vmatmul.msk.f32.gmra.mxu0 %vm357_vm0, %v211_v59  ;;  %3192 = vmatmul.msk.f32.gmra.mxu2 %vm357_vm0, %v289_v60 }
  0xb9   : > { %3255 = vmatmul.msk.f32.gmra.mxu1 %vm1476_vm1, %v1320_v61 }
  0xbb   : > { %v1089_v62 = vpop.f32.mrf.mxu2 }
  0xbc   : > { %v1398_v63 = vmax.f32 %v1089_v62, 0.0 }
  0xbd   : > { %v858_v0 = vpop.f32.mrf.mxu0 }
  0xbe   : > { %v1321_v3 = vmax.f32 %v858_v0, 0.0  ;;  %3333 = vmatmul.msk.f32.gmra.mxu3 %vm1476_vm1, %v1398_v63  ;;  %v222_v63 = vld [vmem:[%s3692_s17 + $0xf0] sm:$0xff]  ;;  %v300_v0 = vld [vmem:[%s3692_s17 + $0x360] sm:$0xff] }
  0xc0   : > { %3115 = vmatmul.msk.f32.gmra.mxu0 %vm357_vm0, %v212_v1  ;;  %3193 = vmatmul.msk.f32.gmra.mxu2 %vm357_vm0, %v290_v2 }
  0xc1   : > { %3256 = vmatmul.msk.f32.gmra.mxu1 %vm1476_vm1, %v1321_v3 }
  0xc3   : > { %v1092_v4 = vpop.f32.mrf.mxu2 }
  0xc4   : > { %v1399_v5 = vmax.f32 %v1092_v4, 0.0 }
  0xc5   : > { %v861_v6 = vpop.f32.mrf.mxu0 }
  0xc6   : > { %v1322_v9 = vmax.f32 %v861_v6, 0.0  ;;  %3334 = vmatmul.msk.f32.gmra.mxu3 %vm1476_vm1, %v1399_v5  ;;  %v223_v5 = vld [vmem:[%s3692_s17 + $0xf8] sm:$0xff]  ;;  %v301_v6 = vld [vmem:[%s3692_s17 + $0x368] sm:$0xff] }
  0xc8   : > { %3116 = vmatmul.msk.f32.gmra.mxu0 %vm357_vm0, %v213_v7  ;;  %3194 = vmatmul.msk.f32.gmra.mxu2 %vm357_vm0, %v291_v8 }
  0xc9   : > { %3257 = vmatmul.msk.f32.gmra.mxu1 %vm1476_vm1, %v1322_v9 }
  0xcb   : > { %v1095_v10 = vpop.f32.mrf.mxu2 }
  0xcc   : > { %v1400_v11 = vmax.f32 %v1095_v10, 0.0 }
  0xcd   : > { %v864_v12 = vpop.f32.mrf.mxu0 }
  0xce   : > { %v1323_v15 = vmax.f32 %v864_v12, 0.0  ;;  %3335 = vmatmul.msk.f32.gmra.mxu3 %vm1476_vm1, %v1400_v11  ;;  %v224_v11 = vld [vmem:[%s3692_s17 + $0x100] sm:$0xff]  ;;  %v302_v12 = vld [vmem:[%s3692_s17 + $0x370] sm:$0xff] }
  0xd0   : > { %3117 = vmatmul.msk.f32.gmra.mxu0 %vm357_vm0, %v214_v13  ;;  %3195 = vmatmul.msk.f32.gmra.mxu2 %vm357_vm0, %v292_v14 }
  0xd1   : > { %3258 = vmatmul.msk.f32.gmra.mxu1 %vm1476_vm1, %v1323_v15 }
  0xd3   : > { %v1098_v16 = vpop.f32.mrf.mxu2 }
  0xd4   : > { %v1401_v17 = vmax.f32 %v1098_v16, 0.0 }
  0xd5   : > { %v867_v18 = vpop.f32.mrf.mxu0 }
  0xd6   : > { %v1324_v21 = vmax.f32 %v867_v18, 0.0  ;;  %3336 = vmatmul.msk.f32.gmra.mxu3 %vm1476_vm1, %v1401_v17 }
  0xd8   : > { %3118 = vmatmul.msk.f32.gmra.mxu0 %vm357_vm0, %v215_v19  ;;  %3196 = vmatmul.msk.f32.gmra.mxu2 %vm357_vm0, %v293_v20  ;;  %v225_v19 = vld [vmem:[%s3692_s17 + $0x108] sm:$0xff]  ;;  %v303_v20 = vld [vmem:[%s3692_s17 + $0x378] sm:$0xff] }
  0xd9   : > { %3259 = vmatmul.msk.f32.gmra.mxu1 %vm1476_vm1, %v1324_v21 }
  0xdb   : > { %v1101_v22 = vpop.f32.mrf.mxu2 }
  0xdc   : > { %v1402_v23 = vmax.f32 %v1101_v22, 0.0 }
  0xdd   : > { %v870_v24 = vpop.f32.mrf.mxu0 }
  0xde   : > { %v1325_v27 = vmax.f32 %v870_v24, 0.0  ;;  %3337 = vmatmul.msk.f32.gmra.mxu3 %vm1476_vm1, %v1402_v23 }
  0xe0   : > { %3119 = vmatmul.msk.f32.gmra.mxu0 %vm357_vm0, %v216_v25  ;;  %3197 = vmatmul.msk.f32.gmra.mxu2 %vm357_vm0, %v294_v26 }
  0xe1   : > { %3260 = vmatmul.msk.f32.gmra.mxu1 %vm1476_vm1, %v1325_v27  ;;  %v226_v27 = vld [vmem:[%s3692_s17 + $0x110] sm:$0xff] }
  0xe3   : > { %v1104_v28 = vpop.f32.mrf.mxu2 }
  0xe4   : > { %v1403_v29 = vmax.f32 %v1104_v28, 0.0  ;;  %v304_v28 = vld [vmem:[%s3692_s17 + $0x380] sm:$0xff] }
  0xe5   : > { %v873_v30 = vpop.f32.mrf.mxu0 }
  0xe6   : > { %v1326_v33 = vmax.f32 %v873_v30, 0.0  ;;  %3338 = vmatmul.msk.f32.gmra.mxu3 %vm1476_vm1, %v1403_v29 }
  0xe8   : > { %3120 = vmatmul.msk.f32.gmra.mxu0 %vm357_vm0, %v217_v31  ;;  %3198 = vmatmul.msk.f32.gmra.mxu2 %vm357_vm0, %v295_v32 }
  0xe9   : > { %3261 = vmatmul.msk.f32.gmra.mxu1 %vm1476_vm1, %v1326_v33 }
  0xeb   : > { %v1107_v34 = vpop.f32.mrf.mxu2 }
  0xec   : > { %v1404_v35 = vmax.f32 %v1107_v34, 0.0 }
  0xed   : > { %v876_v36 = vpop.f32.mrf.mxu0 }
  0xee   : > { %v1327_v39 = vmax.f32 %v876_v36, 0.0  ;;  %3339 = vmatmul.msk.f32.gmra.mxu3 %vm1476_vm1, %v1404_v35  ;;  %v227_v35 = vld [vmem:[%s3692_s17 + $0x118] sm:$0xff]  ;;  %v305_v36 = vld [vmem:[%s3692_s17 + $0x388] sm:$0xff] }
  0xf0   : > { %3121 = vmatmul.msk.f32.gmra.mxu0 %vm357_vm0, %v218_v37  ;;  %3199 = vmatmul.msk.f32.gmra.mxu2 %vm357_vm0, %v296_v38 }
  0xf1   : > { %3262 = vmatmul.msk.f32.gmra.mxu1 %vm1476_vm1, %v1327_v39 }
  0xf3   : > { %v1110_v40 = vpop.f32.mrf.mxu2 }
  0xf4   : > { %v1405_v41 = vmax.f32 %v1110_v40, 0.0 }
  0xf5   : > { %v879_v42 = vpop.f32.mrf.mxu0 }
  0xf6   : > { %v1328_v45 = vmax.f32 %v879_v42, 0.0  ;;  %3340 = vmatmul.msk.f32.gmra.mxu3 %vm1476_vm1, %v1405_v41 }
  0xf8   : > { %3122 = vmatmul.msk.f32.gmra.mxu0 %vm357_vm0, %v219_v43  ;;  %3200 = vmatmul.msk.f32.gmra.mxu2 %vm357_vm0, %v297_v44 }
  0xf9   : > { %3263 = vmatmul.msk.f32.gmra.mxu1 %vm1476_vm1, %v1328_v45  ;;  %v228_v45 = vld [vmem:[%s3692_s17 + $0x120] sm:$0xff] }
  0xfb   : > { %v1113_v47 = vpop.f32.mrf.mxu2 }
  0xfc   : > { %v1406_v48 = vmax.f32 %v1113_v47, 0.0  ;;  %v306_v47 = vld [vmem:[%s3692_s17 + $0x390] sm:$0xff] }
  0xfd   : > { %v882_v49 = vpop.f32.mrf.mxu0 }
  0xfe   : > { %v1329_v53 = vmax.f32 %v882_v49, 0.0  ;;  %3341 = vmatmul.msk.f32.gmra.mxu3 %vm1476_vm1, %v1406_v48 }
 0x100   : > { %3123 = vmatmul.msk.f32.gmra.mxu0 %vm357_vm0, %v220_v50  ;;  %3201 = vmatmul.msk.f32.gmra.mxu2 %vm357_vm0, %v298_v52 }
 0x101   : > { %3264 = vmatmul.msk.f32.gmra.mxu1 %vm1476_vm1, %v1329_v53 }
 0x103   : > { %v1116_v54 = vpop.f32.mrf.mxu2 }
 0x104   : > { %v1407_v55 = vmax.f32 %v1116_v54, 0.0 }
 0x105   : > { %v885_v56 = vpop.f32.mrf.mxu0 }
 0x106   : > { %v1330_v59 = vmax.f32 %v885_v56, 0.0  ;;  %3342 = vmatmul.msk.f32.gmra.mxu3 %vm1476_vm1, %v1407_v55 }
 0x108   : > { %3124 = vmatmul.msk.f32.gmra.mxu0 %vm357_vm0, %v221_v57  ;;  %3202 = vmatmul.msk.f32.gmra.mxu2 %vm357_vm0, %v299_v58  ;;  %v229_v57 = vld [vmem:[%s3692_s17 + $0x128] sm:$0xff]  ;;  %v307_v58 = vld [vmem:[%s3692_s17 + $0x398] sm:$0xff] }
 0x109   : > { %3265 = vmatmul.msk.f32.gmra.mxu1 %vm1476_vm1, %v1330_v59 }
 0x10b   : > { %v1119_v60 = vpop.f32.mrf.mxu2 }
 0x10c   : > { %v1408_v61 = vmax.f32 %v1119_v60, 0.0 }
 0x10d   : > { %v888_v62 = vpop.f32.mrf.mxu0 }
 0x10e   : > { %v1331_v1 = vmax.f32 %v888_v62, 0.0  ;;  %3343 = vmatmul.msk.f32.gmra.mxu3 %vm1476_vm1, %v1408_v61 }
 0x110   : > { %3125 = vmatmul.msk.f32.gmra.mxu0 %vm357_vm0, %v222_v63  ;;  %3203 = vmatmul.msk.f32.gmra.mxu2 %vm357_vm0, %v300_v0 }
 0x111   : > { %3266 = vmatmul.msk.f32.gmra.mxu1 %vm1476_vm1, %v1331_v1 }
 0x113   : > { %v1122_v2 = vpop.f32.mrf.mxu2 }
 0x114   : > { %v1409_v3 = vmax.f32 %v1122_v2, 0.0 }
 0x115   : > { %v891_v4 = vpop.f32.mrf.mxu0 }
 0x116   : > { %v1332_v7 = vmax.f32 %v891_v4, 0.0  ;;  %3344 = vmatmul.msk.f32.gmra.mxu3 %vm1476_vm1, %v1409_v3  ;;  %v230_v3 = vld [vmem:[%s3692_s17 + $0x130] sm:$0xff]  ;;  %v308_v4 = vld [vmem:[%s3692_s17 + $0x3a0] sm:$0xff] }
 0x118   : > { %3126 = vmatmul.msk.f32.gmra.mxu0 %vm357_vm0, %v223_v5  ;;  %3204 = vmatmul.msk.f32.gmra.mxu2 %vm357_vm0, %v301_v6 }
 0x119   : > { %3267 = vmatmul.msk.f32.gmra.mxu1 %vm1476_vm1, %v1332_v7 }
 0x11b   : > { %v1125_v8 = vpop.f32.mrf.mxu2 }
 0x11c   : > { %v1410_v9 = vmax.f32 %v1125_v8, 0.0 }
 0x11d   : > { %v894_v10 = vpop.f32.mrf.mxu0 }
 0x11e   : > { %v1333_v13 = vmax.f32 %v894_v10, 0.0  ;;  %v1965_v14 = vpop.f32.mrf.mxu1  ;;  %3345 = vmatmul.msk.f32.gmra.mxu3 %vm1476_vm1, %v1410_v9 }
 0x11f   : > { %v2436_v15 = vmax.f32 %v1965_v14, 0.0  ;;  %v309_v14 = vld [vmem:[%s3692_s17 + $0x3a8] sm:$0xff] }
 0x120   : > { %3127 = vmatmul.msk.f32.gmra.mxu0 %vm357_vm0, %v224_v11  ;;  %3205 = vmatmul.msk.f32.gmra.mxu2 %vm357_vm0, %v302_v12 }
 0x121   : > { %2593 = vst.msk [vmem:[%s3870_s12] sm:$0xff] %vm357_vm0, %v2436_v15  ;;  %3268 = vmatmul.msk.f32.gmra.mxu1 %vm1476_vm1, %v1333_v13  ;;  %v231_v13 = vld [vmem:[%s3692_s17 + $0x138] sm:$0xff] }
 0x123   : > { %v1128_v16 = vpop.f32.mrf.mxu2 }
 0x124   : > { %v1411_v17 = vmax.f32 %v1128_v16, 0.0 }
 0x125   : > { %v897_v18 = vpop.f32.mrf.mxu0 }
 0x126   : > { %v1334_v21 = vmax.f32 %v897_v18, 0.0  ;;  %v1968_v22 = vpop.f32.mrf.mxu1  ;;  %3346 = vmatmul.msk.f32.gmra.mxu3 %vm1476_vm1, %v1411_v17 }
 0x127   : > { %v2437_v23 = vmax.f32 %v1968_v22, 0.0 }
 0x128   : > { %3128 = vmatmul.msk.f32.gmra.mxu0 %vm357_vm0, %v225_v19  ;;  %3206 = vmatmul.msk.f32.gmra.mxu2 %vm357_vm0, %v303_v20 }
 0x129   : > { %2594 = vst.msk [vmem:[%s3870_s12 + $0x8] sm:$0xff] %vm357_vm0, %v2437_v23  ;;  %3269 = vmatmul.msk.f32.gmra.mxu1 %vm1476_vm1, %v1334_v21  ;;  %v232_v23 = vld [vmem:[%s3692_s17 + $0x140] sm:$0xff] }
 0x12b   : > { %v1131_v24 = vpop.f32.mrf.mxu2 }
 0x12c   : > { %v1412_v25 = vmax.f32 %v1131_v24, 0.0  ;;  %v310_v24 = vld [vmem:[%s3692_s17 + $0x3b0] sm:$0xff] }
 0x12d   : > { %v900_v26 = vpop.f32.mrf.mxu0 }
 0x12e   : > { %v1335_v29 = vmax.f32 %v900_v26, 0.0  ;;  %v1971_v30 = vpop.f32.mrf.mxu1  ;;  %3347 = vmatmul.msk.f32.gmra.mxu3 %vm1476_vm1, %v1412_v25 }
 0x12f   : > { %v2438_v31 = vmax.f32 %v1971_v30, 0.0 }
 0x130   : > { %3129 = vmatmul.msk.f32.gmra.mxu0 %vm357_vm0, %v226_v27  ;;  %3207 = vmatmul.msk.f32.gmra.mxu2 %vm357_vm0, %v304_v28 }
 0x131   : > { %2595 = vst.msk [vmem:[%s3870_s12 + $0x10] sm:$0xff] %vm357_vm0, %v2438_v31  ;;  %3270 = vmatmul.msk.f32.gmra.mxu1 %vm1476_vm1, %v1335_v29 }
 0x133   : > { %v1134_v32 = vpop.f32.mrf.mxu2 }
 0x134   : > { %v1413_v33 = vmax.f32 %v1134_v32, 0.0 }
 0x135   : > { %v903_v34 = vpop.f32.mrf.mxu0 }
 0x136   : > { %v1336_v37 = vmax.f32 %v903_v34, 0.0  ;;  %v1974_v38 = vpop.f32.mrf.mxu1  ;;  %3348 = vmatmul.msk.f32.gmra.mxu3 %vm1476_vm1, %v1413_v33  ;;  %v233_v33 = vld [vmem:[%s3692_s17 + $0x148] sm:$0xff]  ;;  %v311_v34 = vld [vmem:[%s3692_s17 + $0x3b8] sm:$0xff] }
 0x137   : > { %v2439_v39 = vmax.f32 %v1974_v38, 0.0 }
 0x138   : > { %3130 = vmatmul.msk.f32.gmra.mxu0 %vm357_vm0, %v227_v35  ;;  %3208 = vmatmul.msk.f32.gmra.mxu2 %vm357_vm0, %v305_v36 }
 0x139   : > { %2596 = vst.msk [vmem:[%s3870_s12 + $0x18] sm:$0xff] %vm357_vm0, %v2439_v39  ;;  %3271 = vmatmul.msk.f32.gmra.mxu1 %vm1476_vm1, %v1336_v37  ;;  %v2205_v40 = vpop.f32.mrf.mxu3 }
 0x13a   : > { %v2516_v41 = vmax.f32 %v2205_v40, 0.0 }
 0x13b   : > { %v1137_v42 = vpop.f32.mrf.mxu2 }
 0x13c   : > { %2673 = vst.msk [vmem:[%s3870_s12 + $0x280] sm:$0xff] %vm357_vm0, %v2516_v41  ;;  %v1414_v43 = vmax.f32 %v1137_v42, 0.0 }
 0x13d   : > { %v906_v44 = vpop.f32.mrf.mxu0 }
 0x13e   : > { %v1337_v48 = vmax.f32 %v906_v44, 0.0  ;;  %v1977_v49 = vpop.f32.mrf.mxu1  ;;  %3349 = vmatmul.msk.f32.gmra.mxu3 %vm1476_vm1, %v1414_v43  ;;  %v234_v43 = vld [vmem:[%s3692_s17 + $0x150] sm:$0xff]  ;;  %v312_v44 = vld [vmem:[%s3692_s17 + $0x3c0] sm:$0xff] }
 0x13f   : > { %v2440_v50 = vmax.f32 %v1977_v49, 0.0 }
 0x140   : > { %3131 = vmatmul.msk.f32.gmra.mxu0 %vm357_vm0, %v228_v45  ;;  %3209 = vmatmul.msk.f32.gmra.mxu2 %vm357_vm0, %v306_v47 }
 0x141   : > { %2597 = vst.msk [vmem:[%s3870_s12 + $0x20] sm:$0xff] %vm357_vm0, %v2440_v50  ;;  %3272 = vmatmul.msk.f32.gmra.mxu1 %vm1476_vm1, %v1337_v48  ;;  %v2208_v52 = vpop.f32.mrf.mxu3 }
 0x142   : > { %v2517_v53 = vmax.f32 %v2208_v52, 0.0 }
 0x143   : > { %v1140_v54 = vpop.f32.mrf.mxu2 }
 0x144   : > { %2674 = vst.msk [vmem:[%s3870_s12 + $0x288] sm:$0xff] %vm357_vm0, %v2517_v53  ;;  %v1415_v55 = vmax.f32 %v1140_v54, 0.0 }
 0x145   : > { %v909_v56 = vpop.f32.mrf.mxu0 }
 0x146   : > { %v1338_v59 = vmax.f32 %v909_v56, 0.0  ;;  %v1980_v60 = vpop.f32.mrf.mxu1  ;;  %3350 = vmatmul.msk.f32.gmra.mxu3 %vm1476_vm1, %v1415_v55  ;;  %v235_v55 = vld [vmem:[%s3692_s17 + $0x158] sm:$0xff]  ;;  %v313_v56 = vld [vmem:[%s3692_s17 + $0x3c8] sm:$0xff] }
 0x147   : > { %v2441_v61 = vmax.f32 %v1980_v60, 0.0 }
 0x148   : > { %3132 = vmatmul.msk.f32.gmra.mxu0 %vm357_vm0, %v229_v57  ;;  %3210 = vmatmul.msk.f32.gmra.mxu2 %vm357_vm0, %v307_v58 }
 0x149   : > { %2598 = vst.msk [vmem:[%s3870_s12 + $0x28] sm:$0xff] %vm357_vm0, %v2441_v61  ;;  %3273 = vmatmul.msk.f32.gmra.mxu1 %vm1476_vm1, %v1338_v59  ;;  %v2211_v62 = vpop.f32.mrf.mxu3 }
 0x14a   : > { %v2518_v63 = vmax.f32 %v2211_v62, 0.0 }
 0x14b   : > { %v1143_v0 = vpop.f32.mrf.mxu2 }
 0x14c   : > { %2675 = vst.msk [vmem:[%s3870_s12 + $0x290] sm:$0xff] %vm357_vm0, %v2518_v63  ;;  %v1416_v1 = vmax.f32 %v1143_v0, 0.0 }
 0x14d   : > { %v912_v2 = vpop.f32.mrf.mxu0 }
 0x14e   : > { %v1339_v5 = vmax.f32 %v912_v2, 0.0  ;;  %v1983_v6 = vpop.f32.mrf.mxu1  ;;  %3351 = vmatmul.msk.f32.gmra.mxu3 %vm1476_vm1, %v1416_v1  ;;  %v236_v1 = vld [vmem:[%s3692_s17 + $0x160] sm:$0xff]  ;;  %v314_v2 = vld [vmem:[%s3692_s17 + $0x3d0] sm:$0xff] }
 0x14f   : > { %v2442_v7 = vmax.f32 %v1983_v6, 0.0 }
 0x150   : > { %3133 = vmatmul.msk.f32.gmra.mxu0 %vm357_vm0, %v230_v3  ;;  %3211 = vmatmul.msk.f32.gmra.mxu2 %vm357_vm0, %v308_v4 }
 0x151   : > { %2599 = vst.msk [vmem:[%s3870_s12 + $0x30] sm:$0xff] %vm357_vm0, %v2442_v7  ;;  %3274 = vmatmul.msk.f32.gmra.mxu1 %vm1476_vm1, %v1339_v5  ;;  %v2214_v8 = vpop.f32.mrf.mxu3 }
 0x152   : > { %v2519_v9 = vmax.f32 %v2214_v8, 0.0 }
 0x153   : > { %v1146_v10 = vpop.f32.mrf.mxu2 }
 0x154   : > { %2676 = vst.msk [vmem:[%s3870_s12 + $0x298] sm:$0xff] %vm357_vm0, %v2519_v9  ;;  %v1417_v11 = vmax.f32 %v1146_v10, 0.0 }
 0x155   : > { %v915_v12 = vpop.f32.mrf.mxu0 }
 0x156   : > { %v1340_v15 = vmax.f32 %v915_v12, 0.0  ;;  %v1986_v16 = vpop.f32.mrf.mxu1  ;;  %3352 = vmatmul.msk.f32.gmra.mxu3 %vm1476_vm1, %v1417_v11  ;;  %v237_v11 = vld [vmem:[%s3692_s17 + $0x168] sm:$0xff]  ;;  %v315_v12 = vld [vmem:[%s3692_s17 + $0x3d8] sm:$0xff] }
 0x157   : > { %v2443_v17 = vmax.f32 %v1986_v16, 0.0 }
 0x158   : > { %3134 = vmatmul.msk.f32.gmra.mxu0 %vm357_vm0, %v231_v13  ;;  %3212 = vmatmul.msk.f32.gmra.mxu2 %vm357_vm0, %v309_v14 }
 0x159   : > { %2600 = vst.msk [vmem:[%s3870_s12 + $0x38] sm:$0xff] %vm357_vm0, %v2443_v17  ;;  %3275 = vmatmul.msk.f32.gmra.mxu1 %vm1476_vm1, %v1340_v15  ;;  %v2217_v18 = vpop.f32.mrf.mxu3 }
 0x15a   : > { %v2520_v19 = vmax.f32 %v2217_v18, 0.0 }
 0x15b   : > { %v1149_v20 = vpop.f32.mrf.mxu2 }
 0x15c   : > { %2677 = vst.msk [vmem:[%s3870_s12 + $0x2a0] sm:$0xff] %vm357_vm0, %v2520_v19  ;;  %v1418_v21 = vmax.f32 %v1149_v20, 0.0 }
 0x15d   : > { %v918_v22 = vpop.f32.mrf.mxu0 }
 0x15e   : > { %v1341_v25 = vmax.f32 %v918_v22, 0.0  ;;  %v1989_v26 = vpop.f32.mrf.mxu1  ;;  %3353 = vmatmul.msk.f32.gmra.mxu3 %vm1476_vm1, %v1418_v21  ;;  %v238_v21 = vld [vmem:[%s3692_s17 + $0x170] sm:$0xff]  ;;  %v316_v22 = vld [vmem:[%s3692_s17 + $0x3e0] sm:$0xff] }
 0x15f   : > { %v2444_v27 = vmax.f32 %v1989_v26, 0.0 }
 0x160   : > { %3135 = vmatmul.msk.f32.gmra.mxu0 %vm357_vm0, %v232_v23  ;;  %3213 = vmatmul.msk.f32.gmra.mxu2 %vm357_vm0, %v310_v24 }
 0x161   : > { %2601 = vst.msk [vmem:[%s3870_s12 + $0x40] sm:$0xff] %vm357_vm0, %v2444_v27  ;;  %3276 = vmatmul.msk.f32.gmra.mxu1 %vm1476_vm1, %v1341_v25  ;;  %v2220_v28 = vpop.f32.mrf.mxu3 }
 0x162   : > { %v2521_v29 = vmax.f32 %v2220_v28, 0.0 }
 0x163   : > { %v1152_v30 = vpop.f32.mrf.mxu2 }
 0x164   : > { %2678 = vst.msk [vmem:[%s3870_s12 + $0x2a8] sm:$0xff] %vm357_vm0, %v2521_v29  ;;  %v1419_v31 = vmax.f32 %v1152_v30, 0.0 }
 0x165   : > { %v921_v32 = vpop.f32.mrf.mxu0 }
 0x166   : > { %v1342_v35 = vmax.f32 %v921_v32, 0.0  ;;  %v1992_v36 = vpop.f32.mrf.mxu1  ;;  %3354 = vmatmul.msk.f32.gmra.mxu3 %vm1476_vm1, %v1419_v31  ;;  %v239_v31 = vld [vmem:[%s3692_s17 + $0x178] sm:$0xff]  ;;  %v317_v32 = vld [vmem:[%s3692_s17 + $0x3e8] sm:$0xff] }
 0x167   : > { %v2445_v37 = vmax.f32 %v1992_v36, 0.0 }
 0x168   : > { %3136 = vmatmul.msk.f32.gmra.mxu0 %vm357_vm0, %v233_v33  ;;  %3214 = vmatmul.msk.f32.gmra.mxu2 %vm357_vm0, %v311_v34 }
 0x169   : > { %2602 = vst.msk [vmem:[%s3870_s12 + $0x48] sm:$0xff] %vm357_vm0, %v2445_v37  ;;  %3277 = vmatmul.msk.f32.gmra.mxu1 %vm1476_vm1, %v1342_v35  ;;  %v2223_v38 = vpop.f32.mrf.mxu3 }
 0x16a   : > { %v2522_v39 = vmax.f32 %v2223_v38, 0.0 }
 0x16b   : > { %v1155_v40 = vpop.f32.mrf.mxu2 }
 0x16c   : > { %2679 = vst.msk [vmem:[%s3870_s12 + $0x2b0] sm:$0xff] %vm357_vm0, %v2522_v39  ;;  %v1420_v41 = vmax.f32 %v1155_v40, 0.0 }
 0x16d   : > { %v924_v42 = vpop.f32.mrf.mxu0 }
 0x16e   : > { %v1343_v45 = vmax.f32 %v924_v42, 0.0  ;;  %v1995_v47 = vpop.f32.mrf.mxu1  ;;  %3355 = vmatmul.msk.f32.gmra.mxu3 %vm1476_vm1, %v1420_v41  ;;  %v240_v41 = vld [vmem:[%s3692_s17 + $0x180] sm:$0xff]  ;;  %v318_v42 = vld [vmem:[%s3692_s17 + $0x3f0] sm:$0xff] }
 0x16f   : > { %v2446_v48 = vmax.f32 %v1995_v47, 0.0 }
 0x170   : > { %3137 = vmatmul.msk.f32.gmra.mxu0 %vm357_vm0, %v234_v43  ;;  %3215 = vmatmul.msk.f32.gmra.mxu2 %vm357_vm0, %v312_v44 }
 0x171   : > { %2603 = vst.msk [vmem:[%s3870_s12 + $0x50] sm:$0xff] %vm357_vm0, %v2446_v48  ;;  %3278 = vmatmul.msk.f32.gmra.mxu1 %vm1476_vm1, %v1343_v45  ;;  %v2226_v49 = vpop.f32.mrf.mxu3 }
 0x172   : > { %v2523_v50 = vmax.f32 %v2226_v49, 0.0 }
 0x173   : > { %v1158_v52 = vpop.f32.mrf.mxu2 }
 0x174   : > { %2680 = vst.msk [vmem:[%s3870_s12 + $0x2b8] sm:$0xff] %vm357_vm0, %v2523_v50  ;;  %v1421_v53 = vmax.f32 %v1158_v52, 0.0 }
 0x175   : > { %v927_v54 = vpop.f32.mrf.mxu0 }
 0x176   : > { %v1344_v57 = vmax.f32 %v927_v54, 0.0  ;;  %v1998_v58 = vpop.f32.mrf.mxu1  ;;  %3356 = vmatmul.msk.f32.gmra.mxu3 %vm1476_vm1, %v1421_v53  ;;  %v241_v53 = vld [vmem:[%s3692_s17 + $0x188] sm:$0xff]  ;;  %v319_v54 = vld [vmem:[%s3692_s17 + $0x3f8] sm:$0xff] }
 0x177   : > { %v2447_v59 = vmax.f32 %v1998_v58, 0.0 }
 0x178   : > { %3138 = vmatmul.msk.f32.gmra.mxu0 %vm357_vm0, %v235_v55  ;;  %3216 = vmatmul.msk.f32.gmra.mxu2 %vm357_vm0, %v313_v56 }
 0x179   : > { %2604 = vst.msk [vmem:[%s3870_s12 + $0x58] sm:$0xff] %vm357_vm0, %v2447_v59  ;;  %3279 = vmatmul.msk.f32.gmra.mxu1 %vm1476_vm1, %v1344_v57  ;;  %v2229_v60 = vpop.f32.mrf.mxu3 }
 0x17a   : > { %v2524_v61 = vmax.f32 %v2229_v60, 0.0 }
 0x17b   : > { %v1161_v62 = vpop.f32.mrf.mxu2 }
 0x17c   : > { %2681 = vst.msk [vmem:[%s3870_s12 + $0x2c0] sm:$0xff] %vm357_vm0, %v2524_v61  ;;  %v1422_v63 = vmax.f32 %v1161_v62, 0.0 }
 0x17d   : > { %v930_v0 = vpop.f32.mrf.mxu0 }
 0x17e   : > { %v1345_v3 = vmax.f32 %v930_v0, 0.0  ;;  %v2001_v4 = vpop.f32.mrf.mxu1  ;;  %3357 = vmatmul.msk.f32.gmra.mxu3 %vm1476_vm1, %v1422_v63  ;;  %v242_v63 = vld [vmem:[%s3692_s17 + $0x190] sm:$0xff]  ;;  %v320_v0 = vld [vmem:[%s3692_s17 + $0x400] sm:$0xff] }
 0x17f   : > { %v2448_v5 = vmax.f32 %v2001_v4, 0.0 }
 0x180   : > { %3139 = vmatmul.msk.f32.gmra.mxu0 %vm357_vm0, %v236_v1  ;;  %3217 = vmatmul.msk.f32.gmra.mxu2 %vm357_vm0, %v314_v2 }
 0x181   : > { %2605 = vst.msk [vmem:[%s3870_s12 + $0x60] sm:$0xff] %vm357_vm0, %v2448_v5  ;;  %3280 = vmatmul.msk.f32.gmra.mxu1 %vm1476_vm1, %v1345_v3  ;;  %v2232_v6 = vpop.f32.mrf.mxu3 }
 0x182   : > { %v2525_v7 = vmax.f32 %v2232_v6, 0.0 }
 0x183   : > { %v1164_v8 = vpop.f32.mrf.mxu2 }
 0x184   : > { %2682 = vst.msk [vmem:[%s3870_s12 + $0x2c8] sm:$0xff] %vm357_vm0, %v2525_v7  ;;  %v1423_v9 = vmax.f32 %v1164_v8, 0.0 }
 0x185   : > { %v933_v10 = vpop.f32.mrf.mxu0 }
 0x186   : > { %v1346_v13 = vmax.f32 %v933_v10, 0.0  ;;  %v2004_v14 = vpop.f32.mrf.mxu1  ;;  %3358 = vmatmul.msk.f32.gmra.mxu3 %vm1476_vm1, %v1423_v9  ;;  %v243_v9 = vld [vmem:[%s3692_s17 + $0x198] sm:$0xff]  ;;  %v321_v10 = vld [vmem:[%s3692_s17 + $0x408] sm:$0xff] }
 0x187   : > { %v2449_v15 = vmax.f32 %v2004_v14, 0.0 }
 0x188   : > { %3140 = vmatmul.msk.f32.gmra.mxu0 %vm357_vm0, %v237_v11  ;;  %3218 = vmatmul.msk.f32.gmra.mxu2 %vm357_vm0, %v315_v12 }
 0x189   : > { %2606 = vst.msk [vmem:[%s3870_s12 + $0x68] sm:$0xff] %vm357_vm0, %v2449_v15  ;;  %3281 = vmatmul.msk.f32.gmra.mxu1 %vm1476_vm1, %v1346_v13  ;;  %v2235_v16 = vpop.f32.mrf.mxu3 }
 0x18a   : > { %v2526_v17 = vmax.f32 %v2235_v16, 0.0 }
 0x18b   : > { %v1167_v18 = vpop.f32.mrf.mxu2 }
 0x18c   : > { %2683 = vst.msk [vmem:[%s3870_s12 + $0x2d0] sm:$0xff] %vm357_vm0, %v2526_v17  ;;  %v1424_v19 = vmax.f32 %v1167_v18, 0.0 }
 0x18d   : > { %v936_v20 = vpop.f32.mrf.mxu0 }
 0x18e   : > { %v1347_v23 = vmax.f32 %v936_v20, 0.0  ;;  %v2007_v24 = vpop.f32.mrf.mxu1  ;;  %3359 = vmatmul.msk.f32.gmra.mxu3 %vm1476_vm1, %v1424_v19  ;;  %v244_v19 = vld [vmem:[%s3692_s17 + $0x1a0] sm:$0xff]  ;;  %v322_v20 = vld [vmem:[%s3692_s17 + $0x410] sm:$0xff] }
 0x18f   : > { %v2450_v25 = vmax.f32 %v2007_v24, 0.0 }
 0x190   : > { %3141 = vmatmul.msk.f32.gmra.mxu0 %vm357_vm0, %v238_v21  ;;  %3219 = vmatmul.msk.f32.gmra.mxu2 %vm357_vm0, %v316_v22 }
 0x191   : > { %2607 = vst.msk [vmem:[%s3870_s12 + $0x70] sm:$0xff] %vm357_vm0, %v2450_v25  ;;  %3282 = vmatmul.msk.f32.gmra.mxu1 %vm1476_vm1, %v1347_v23  ;;  %v2238_v26 = vpop.f32.mrf.mxu3 }
 0x192   : > { %v2527_v27 = vmax.f32 %v2238_v26, 0.0 }
 0x193   : > { %v1170_v28 = vpop.f32.mrf.mxu2 }
 0x194   : > { %2684 = vst.msk [vmem:[%s3870_s12 + $0x2d8] sm:$0xff] %vm357_vm0, %v2527_v27  ;;  %v1425_v29 = vmax.f32 %v1170_v28, 0.0 }
 0x195   : > { %v939_v30 = vpop.f32.mrf.mxu0 }
 0x196   : > { %v1348_v33 = vmax.f32 %v939_v30, 0.0  ;;  %v2010_v34 = vpop.f32.mrf.mxu1  ;;  %3360 = vmatmul.msk.f32.gmra.mxu3 %vm1476_vm1, %v1425_v29  ;;  %v245_v29 = vld [vmem:[%s3692_s17 + $0x1a8] sm:$0xff]  ;;  %v323_v30 = vld [vmem:[%s3692_s17 + $0x418] sm:$0xff] }
 0x197   : > { %v2451_v35 = vmax.f32 %v2010_v34, 0.0 }
 0x198   : > { %3142 = vmatmul.msk.f32.gmra.mxu0 %vm357_vm0, %v239_v31  ;;  %3220 = vmatmul.msk.f32.gmra.mxu2 %vm357_vm0, %v317_v32 }
 0x199   : > { %2608 = vst.msk [vmem:[%s3870_s12 + $0x78] sm:$0xff] %vm357_vm0, %v2451_v35  ;;  %3283 = vmatmul.msk.f32.gmra.mxu1 %vm1476_vm1, %v1348_v33  ;;  %v2241_v36 = vpop.f32.mrf.mxu3 }
 0x19a   : > { %v2528_v37 = vmax.f32 %v2241_v36, 0.0 }
 0x19b   : > { %v1173_v38 = vpop.f32.mrf.mxu2 }
 0x19c   : > { %2685 = vst.msk [vmem:[%s3870_s12 + $0x2e0] sm:$0xff] %vm357_vm0, %v2528_v37  ;;  %v1426_v39 = vmax.f32 %v1173_v38, 0.0 }
 0x19d   : > { %v942_v40 = vpop.f32.mrf.mxu0 }
 0x19e   : > { %v1349_v43 = vmax.f32 %v942_v40, 0.0  ;;  %v2013_v44 = vpop.f32.mrf.mxu1  ;;  %3361 = vmatmul.msk.f32.gmra.mxu3 %vm1476_vm1, %v1426_v39  ;;  %v246_v39 = vld [vmem:[%s3692_s17 + $0x1b0] sm:$0xff]  ;;  %v324_v40 = vld [vmem:[%s3692_s17 + $0x420] sm:$0xff] }
 0x19f   : > { %v2452_v45 = vmax.f32 %v2013_v44, 0.0 }
 0x1a0   : > { %3143 = vmatmul.msk.f32.gmra.mxu0 %vm357_vm0, %v240_v41  ;;  %3221 = vmatmul.msk.f32.gmra.mxu2 %vm357_vm0, %v318_v42 }
 0x1a1   : > { %2609 = vst.msk [vmem:[%s3870_s12 + $0x80] sm:$0xff] %vm357_vm0, %v2452_v45  ;;  %3284 = vmatmul.msk.f32.gmra.mxu1 %vm1476_vm1, %v1349_v43  ;;  %v2244_v47 = vpop.f32.mrf.mxu3 }
 0x1a2   : > { %v2529_v48 = vmax.f32 %v2244_v47, 0.0 }
 0x1a3   : > { %v1176_v49 = vpop.f32.mrf.mxu2 }
 0x1a4   : > { %2686 = vst.msk [vmem:[%s3870_s12 + $0x2e8] sm:$0xff] %vm357_vm0, %v2529_v48  ;;  %v1427_v50 = vmax.f32 %v1176_v49, 0.0 }
 0x1a5   : > { %v945_v52 = vpop.f32.mrf.mxu0 }
 0x1a6   : > { %v1350_v55 = vmax.f32 %v945_v52, 0.0  ;;  %v2016_v56 = vpop.f32.mrf.mxu1  ;;  %3362 = vmatmul.msk.f32.gmra.mxu3 %vm1476_vm1, %v1427_v50  ;;  %v247_v50 = vld [vmem:[%s3692_s17 + $0x1b8] sm:$0xff]  ;;  %v325_v52 = vld [vmem:[%s3692_s17 + $0x428] sm:$0xff] }
 0x1a7   : > { %v2453_v57 = vmax.f32 %v2016_v56, 0.0 }
 0x1a8   : > { %3144 = vmatmul.msk.f32.gmra.mxu0 %vm357_vm0, %v241_v53  ;;  %3222 = vmatmul.msk.f32.gmra.mxu2 %vm357_vm0, %v319_v54 }
 0x1a9   : > { %2610 = vst.msk [vmem:[%s3870_s12 + $0x88] sm:$0xff] %vm357_vm0, %v2453_v57  ;;  %3285 = vmatmul.msk.f32.gmra.mxu1 %vm1476_vm1, %v1350_v55  ;;  %v2247_v58 = vpop.f32.mrf.mxu3 }
 0x1aa   : > { %v2530_v59 = vmax.f32 %v2247_v58, 0.0 }
 0x1ab   : > { %v1179_v60 = vpop.f32.mrf.mxu2 }
 0x1ac   : > { %2687 = vst.msk [vmem:[%s3870_s12 + $0x2f0] sm:$0xff] %vm357_vm0, %v2530_v59  ;;  %v1428_v61 = vmax.f32 %v1179_v60, 0.0 }
 0x1ad   : > { %v948_v62 = vpop.f32.mrf.mxu0 }
 0x1ae   : > { %v1351_v1 = vmax.f32 %v948_v62, 0.0  ;;  %v2019_v2 = vpop.f32.mrf.mxu1  ;;  %3363 = vmatmul.msk.f32.gmra.mxu3 %vm1476_vm1, %v1428_v61  ;;  %v248_v61 = vld [vmem:[%s3692_s17 + $0x1c0] sm:$0xff]  ;;  %v326_v62 = vld [vmem:[%s3692_s17 + $0x430] sm:$0xff] }
 0x1af   : > { %v2454_v3 = vmax.f32 %v2019_v2, 0.0 }
 0x1b0   : > { %3145 = vmatmul.msk.f32.gmra.mxu0 %vm357_vm0, %v242_v63  ;;  %3223 = vmatmul.msk.f32.gmra.mxu2 %vm357_vm0, %v320_v0 }
 0x1b1   : > { %2611 = vst.msk [vmem:[%s3870_s12 + $0x90] sm:$0xff] %vm357_vm0, %v2454_v3  ;;  %3286 = vmatmul.msk.f32.gmra.mxu1 %vm1476_vm1, %v1351_v1  ;;  %v2250_v4 = vpop.f32.mrf.mxu3 }
 0x1b2   : > { %v2531_v5 = vmax.f32 %v2250_v4, 0.0 }
 0x1b3   : > { %v1182_v6 = vpop.f32.mrf.mxu2 }
 0x1b4   : > { %2688 = vst.msk [vmem:[%s3870_s12 + $0x2f8] sm:$0xff] %vm357_vm0, %v2531_v5  ;;  %v1429_v7 = vmax.f32 %v1182_v6, 0.0 }
 0x1b5   : > { %v951_v8 = vpop.f32.mrf.mxu0 }
 0x1b6   : > { %v1352_v11 = vmax.f32 %v951_v8, 0.0  ;;  %v2022_v12 = vpop.f32.mrf.mxu1  ;;  %3364 = vmatmul.msk.f32.gmra.mxu3 %vm1476_vm1, %v1429_v7  ;;  %v249_v7 = vld [vmem:[%s3692_s17 + $0x1c8] sm:$0xff]  ;;  %v327_v8 = vld [vmem:[%s3692_s17 + $0x438] sm:$0xff] }
 0x1b7   : > { %v2455_v13 = vmax.f32 %v2022_v12, 0.0 }
 0x1b8   : > { %3146 = vmatmul.msk.f32.gmra.mxu0 %vm357_vm0, %v243_v9  ;;  %3224 = vmatmul.msk.f32.gmra.mxu2 %vm357_vm0, %v321_v10 }
 0x1b9   : > { %2612 = vst.msk [vmem:[%s3870_s12 + $0x98] sm:$0xff] %vm357_vm0, %v2455_v13  ;;  %3287 = vmatmul.msk.f32.gmra.mxu1 %vm1476_vm1, %v1352_v11  ;;  %v2253_v14 = vpop.f32.mrf.mxu3 }
 0x1ba   : > { %v2532_v15 = vmax.f32 %v2253_v14, 0.0 }
 0x1bb   : > { %v1185_v16 = vpop.f32.mrf.mxu2 }
 0x1bc   : > { %2689 = vst.msk [vmem:[%s3870_s12 + $0x300] sm:$0xff] %vm357_vm0, %v2532_v15  ;;  %v1430_v17 = vmax.f32 %v1185_v16, 0.0 }
 0x1bd   : > { %v954_v18 = vpop.f32.mrf.mxu0 }
 0x1be   : > { %v1353_v21 = vmax.f32 %v954_v18, 0.0  ;;  %v2025_v22 = vpop.f32.mrf.mxu1  ;;  %3365 = vmatmul.msk.f32.gmra.mxu3 %vm1476_vm1, %v1430_v17  ;;  %v250_v17 = vld [vmem:[%s3692_s17 + $0x1d0] sm:$0xff]  ;;  %v328_v18 = vld [vmem:[%s3692_s17 + $0x440] sm:$0xff] }
 0x1bf   : > { %v2456_v23 = vmax.f32 %v2025_v22, 0.0 }
 0x1c0   : > { %3147 = vmatmul.msk.f32.gmra.mxu0 %vm357_vm0, %v244_v19  ;;  %3225 = vmatmul.msk.f32.gmra.mxu2 %vm357_vm0, %v322_v20 }
 0x1c1   : > { %2613 = vst.msk [vmem:[%s3870_s12 + $0xa0] sm:$0xff] %vm357_vm0, %v2456_v23  ;;  %3288 = vmatmul.msk.f32.gmra.mxu1 %vm1476_vm1, %v1353_v21  ;;  %v2256_v24 = vpop.f32.mrf.mxu3 }
 0x1c2   : > { %v2533_v25 = vmax.f32 %v2256_v24, 0.0 }
 0x1c3   : > { %v1188_v26 = vpop.f32.mrf.mxu2 }
 0x1c4   : > { %2690 = vst.msk [vmem:[%s3870_s12 + $0x308] sm:$0xff] %vm357_vm0, %v2533_v25  ;;  %v1431_v27 = vmax.f32 %v1188_v26, 0.0 }
 0x1c5   : > { %v957_v28 = vpop.f32.mrf.mxu0 }
 0x1c6   : > { %v1354_v31 = vmax.f32 %v957_v28, 0.0  ;;  %v2028_v32 = vpop.f32.mrf.mxu1  ;;  %3366 = vmatmul.msk.f32.gmra.mxu3 %vm1476_vm1, %v1431_v27  ;;  %v251_v27 = vld [vmem:[%s3692_s17 + $0x1d8] sm:$0xff]  ;;  %v329_v28 = vld [vmem:[%s3692_s17 + $0x448] sm:$0xff] }
 0x1c7   : > { %v2457_v33 = vmax.f32 %v2028_v32, 0.0 }
 0x1c8   : > { %3148 = vmatmul.msk.f32.gmra.mxu0 %vm357_vm0, %v245_v29  ;;  %3226 = vmatmul.msk.f32.gmra.mxu2 %vm357_vm0, %v323_v30 }
 0x1c9   : > { %2614 = vst.msk [vmem:[%s3870_s12 + $0xa8] sm:$0xff] %vm357_vm0, %v2457_v33  ;;  %3289 = vmatmul.msk.f32.gmra.mxu1 %vm1476_vm1, %v1354_v31  ;;  %v2259_v34 = vpop.f32.mrf.mxu3 }
 0x1ca   : > { %v2534_v35 = vmax.f32 %v2259_v34, 0.0 }
 0x1cb   : > { %v1191_v36 = vpop.f32.mrf.mxu2 }
 0x1cc   : > { %2691 = vst.msk [vmem:[%s3870_s12 + $0x310] sm:$0xff] %vm357_vm0, %v2534_v35  ;;  %v1432_v37 = vmax.f32 %v1191_v36, 0.0 }
 0x1cd   : > { %v960_v38 = vpop.f32.mrf.mxu0 }
 0x1ce   : > { %v1355_v41 = vmax.f32 %v960_v38, 0.0  ;;  %v2031_v42 = vpop.f32.mrf.mxu1  ;;  %3367 = vmatmul.msk.f32.gmra.mxu3 %vm1476_vm1, %v1432_v37  ;;  %v252_v37 = vld [vmem:[%s3692_s17 + $0x1e0] sm:$0xff]  ;;  %v330_v38 = vld [vmem:[%s3692_s17 + $0x450] sm:$0xff] }
 0x1cf   : > { %v2458_v43 = vmax.f32 %v2031_v42, 0.0 }
 0x1d0   : > { %3149 = vmatmul.msk.f32.gmra.mxu0 %vm357_vm0, %v246_v39  ;;  %3227 = vmatmul.msk.f32.gmra.mxu2 %vm357_vm0, %v324_v40 }
 0x1d1   : > { %2615 = vst.msk [vmem:[%s3870_s12 + $0xb0] sm:$0xff] %vm357_vm0, %v2458_v43  ;;  %3290 = vmatmul.msk.f32.gmra.mxu1 %vm1476_vm1, %v1355_v41  ;;  %v2262_v44 = vpop.f32.mrf.mxu3 }
 0x1d2   : > { %v2535_v45 = vmax.f32 %v2262_v44, 0.0 }
 0x1d3   : > { %v1194_v47 = vpop.f32.mrf.mxu2 }
 0x1d4   : > { %2692 = vst.msk [vmem:[%s3870_s12 + $0x318] sm:$0xff] %vm357_vm0, %v2535_v45  ;;  %v1433_v48 = vmax.f32 %v1194_v47, 0.0 }
 0x1d5   : > { %v963_v49 = vpop.f32.mrf.mxu0 }
 0x1d6   : > { %v1356_v53 = vmax.f32 %v963_v49, 0.0  ;;  %v2034_v54 = vpop.f32.mrf.mxu1  ;;  %3368 = vmatmul.msk.f32.gmra.mxu3 %vm1476_vm1, %v1433_v48  ;;  %v253_v48 = vld [vmem:[%s3692_s17 + $0x1e8] sm:$0xff]  ;;  %v331_v49 = vld [vmem:[%s3692_s17 + $0x458] sm:$0xff] }
 0x1d7   : > { %v2459_v55 = vmax.f32 %v2034_v54, 0.0 }
 0x1d8   : > { %3150 = vmatmul.msk.f32.gmra.mxu0 %vm357_vm0, %v247_v50  ;;  %3228 = vmatmul.msk.f32.gmra.mxu2 %vm357_vm0, %v325_v52 }
 0x1d9   : > { %2616 = vst.msk [vmem:[%s3870_s12 + $0xb8] sm:$0xff] %vm357_vm0, %v2459_v55  ;;  %3291 = vmatmul.msk.f32.gmra.mxu1 %vm1476_vm1, %v1356_v53  ;;  %v2265_v56 = vpop.f32.mrf.mxu3 }
 0x1da   : > { %v2536_v57 = vmax.f32 %v2265_v56, 0.0 }
 0x1db   : > { %v1197_v58 = vpop.f32.mrf.mxu2 }
 0x1dc   : > { %2693 = vst.msk [vmem:[%s3870_s12 + $0x320] sm:$0xff] %vm357_vm0, %v2536_v57  ;;  %v1434_v59 = vmax.f32 %v1197_v58, 0.0 }
 0x1dd   : > { %v966_v60 = vpop.f32.mrf.mxu0 }
 0x1de   : > { %v1357_v63 = vmax.f32 %v966_v60, 0.0  ;;  %v2037_v0 = vpop.f32.mrf.mxu1  ;;  %3369 = vmatmul.msk.f32.gmra.mxu3 %vm1476_vm1, %v1434_v59  ;;  %v254_v59 = vld [vmem:[%s3692_s17 + $0x1f0] sm:$0xff]  ;;  %v332_v60 = vld [vmem:[%s3692_s17 + $0x460] sm:$0xff] }
 0x1df   : > { %v2460_v1 = vmax.f32 %v2037_v0, 0.0 }
 0x1e0   : > { %3151 = vmatmul.msk.f32.gmra.mxu0 %vm357_vm0, %v248_v61  ;;  %3229 = vmatmul.msk.f32.gmra.mxu2 %vm357_vm0, %v326_v62 }
 0x1e1   : > { %2617 = vst.msk [vmem:[%s3870_s12 + $0xc0] sm:$0xff] %vm357_vm0, %v2460_v1  ;;  %3292 = vmatmul.msk.f32.gmra.mxu1 %vm1476_vm1, %v1357_v63  ;;  %v2268_v2 = vpop.f32.mrf.mxu3 }
 0x1e2   : > { %v2537_v3 = vmax.f32 %v2268_v2, 0.0 }
 0x1e3   : > { %v1200_v4 = vpop.f32.mrf.mxu2 }
 0x1e4   : > { %2694 = vst.msk [vmem:[%s3870_s12 + $0x328] sm:$0xff] %vm357_vm0, %v2537_v3  ;;  %v1435_v5 = vmax.f32 %v1200_v4, 0.0 }
 0x1e5   : > { %v969_v6 = vpop.f32.mrf.mxu0 }
 0x1e6   : > { %v1358_v9 = vmax.f32 %v969_v6, 0.0  ;;  %v2040_v10 = vpop.f32.mrf.mxu1  ;;  %3370 = vmatmul.msk.f32.gmra.mxu3 %vm1476_vm1, %v1435_v5  ;;  %v255_v5 = vld [vmem:[%s3692_s17 + $0x1f8] sm:$0xff]  ;;  %v333_v6 = vld [vmem:[%s3692_s17 + $0x468] sm:$0xff] }
 0x1e7   : > { %v2461_v11 = vmax.f32 %v2040_v10, 0.0 }
 0x1e8   : > { %3152 = vmatmul.msk.f32.gmra.mxu0 %vm357_vm0, %v249_v7  ;;  %3230 = vmatmul.msk.f32.gmra.mxu2 %vm357_vm0, %v327_v8 }
 0x1e9   : > { %2618 = vst.msk [vmem:[%s3870_s12 + $0xc8] sm:$0xff] %vm357_vm0, %v2461_v11  ;;  %3293 = vmatmul.msk.f32.gmra.mxu1 %vm1476_vm1, %v1358_v9  ;;  %v2271_v12 = vpop.f32.mrf.mxu3 }
 0x1ea   : > { %v2538_v13 = vmax.f32 %v2271_v12, 0.0 }
 0x1eb   : > { %v1203_v14 = vpop.f32.mrf.mxu2 }
 0x1ec   : > { %2695 = vst.msk [vmem:[%s3870_s12 + $0x330] sm:$0xff] %vm357_vm0, %v2538_v13  ;;  %v1436_v15 = vmax.f32 %v1203_v14, 0.0 }
 0x1ed   : > { %v972_v16 = vpop.f32.mrf.mxu0 }
 0x1ee   : > { %v1359_v19 = vmax.f32 %v972_v16, 0.0  ;;  %v2043_v20 = vpop.f32.mrf.mxu1  ;;  %3371 = vmatmul.msk.f32.gmra.mxu3 %vm1476_vm1, %v1436_v15  ;;  %v256_v15 = vld [vmem:[%s3692_s17 + $0x200] sm:$0xff]  ;;  %v334_v16 = vld [vmem:[%s3692_s17 + $0x470] sm:$0xff] }
 0x1ef   : > { %v2462_v21 = vmax.f32 %v2043_v20, 0.0 }
 0x1f0   : > { %3153 = vmatmul.msk.f32.gmra.mxu0 %vm357_vm0, %v250_v17  ;;  %3231 = vmatmul.msk.f32.gmra.mxu2 %vm357_vm0, %v328_v18 }
 0x1f1   : > { %2619 = vst.msk [vmem:[%s3870_s12 + $0xd0] sm:$0xff] %vm357_vm0, %v2462_v21  ;;  %3294 = vmatmul.msk.f32.gmra.mxu1 %vm1476_vm1, %v1359_v19  ;;  %v2274_v22 = vpop.f32.mrf.mxu3 }
 0x1f2   : > { %v2539_v23 = vmax.f32 %v2274_v22, 0.0 }
 0x1f3   : > { %v1206_v24 = vpop.f32.mrf.mxu2 }
 0x1f4   : > { %2696 = vst.msk [vmem:[%s3870_s12 + $0x338] sm:$0xff] %vm357_vm0, %v2539_v23  ;;  %v1437_v25 = vmax.f32 %v1206_v24, 0.0 }
 0x1f5   : > { %v975_v26 = vpop.f32.mrf.mxu0 }
 0x1f6   : > { %v1360_v29 = vmax.f32 %v975_v26, 0.0  ;;  %v2046_v30 = vpop.f32.mrf.mxu1  ;;  %3372 = vmatmul.msk.f32.gmra.mxu3 %vm1476_vm1, %v1437_v25  ;;  %v257_v25 = vld [vmem:[%s3692_s17 + $0x208] sm:$0xff]  ;;  %v335_v26 = vld [vmem:[%s3692_s17 + $0x478] sm:$0xff] }
 0x1f7   : > { %v2463_v31 = vmax.f32 %v2046_v30, 0.0 }
 0x1f8   : > { %3154 = vmatmul.msk.f32.gmra.mxu0 %vm357_vm0, %v251_v27  ;;  %3232 = vmatmul.msk.f32.gmra.mxu2 %vm357_vm0, %v329_v28 }
 0x1f9   : > { %2620 = vst.msk [vmem:[%s3870_s12 + $0xd8] sm:$0xff] %vm357_vm0, %v2463_v31  ;;  %3295 = vmatmul.msk.f32.gmra.mxu1 %vm1476_vm1, %v1360_v29  ;;  %v2277_v32 = vpop.f32.mrf.mxu3 }
 0x1fa   : > { %v2540_v33 = vmax.f32 %v2277_v32, 0.0 }
 0x1fb   : > { %v1209_v34 = vpop.f32.mrf.mxu2 }
 0x1fc   : > { %2697 = vst.msk [vmem:[%s3870_s12 + $0x340] sm:$0xff] %vm357_vm0, %v2540_v33  ;;  %v1438_v35 = vmax.f32 %v1209_v34, 0.0 }
 0x1fd   : > { %v978_v36 = vpop.f32.mrf.mxu0 }
 0x1fe   : > { %v1361_v39 = vmax.f32 %v978_v36, 0.0  ;;  %v2049_v40 = vpop.f32.mrf.mxu1  ;;  %3373 = vmatmul.msk.f32.gmra.mxu3 %vm1476_vm1, %v1438_v35  ;;  %v258_v35 = vld [vmem:[%s3692_s17 + $0x210] sm:$0xff]  ;;  %v336_v36 = vld [vmem:[%s3692_s17 + $0x480] sm:$0xff] }
 0x1ff   : > { %v2464_v41 = vmax.f32 %v2049_v40, 0.0 }
 0x200   : > { %3155 = vmatmul.msk.f32.gmra.mxu0 %vm357_vm0, %v252_v37  ;;  %3233 = vmatmul.msk.f32.gmra.mxu2 %vm357_vm0, %v330_v38 }
 0x201   : > { %2621 = vst.msk [vmem:[%s3870_s12 + $0xe0] sm:$0xff] %vm357_vm0, %v2464_v41  ;;  %3296 = vmatmul.msk.f32.gmra.mxu1 %vm1476_vm1, %v1361_v39  ;;  %v2280_v42 = vpop.f32.mrf.mxu3 }
 0x202   : > { %v2541_v43 = vmax.f32 %v2280_v42, 0.0 }
 0x203   : > { %v1212_v44 = vpop.f32.mrf.mxu2 }
 0x204   : > { %2698 = vst.msk [vmem:[%s3870_s12 + $0x348] sm:$0xff] %vm357_vm0, %v2541_v43  ;;  %v1439_v45 = vmax.f32 %v1212_v44, 0.0 }
 0x205   : > { %v981_v47 = vpop.f32.mrf.mxu0 }
 0x206   : > { %v1362_v50 = vmax.f32 %v981_v47, 0.0  ;;  %v2052_v52 = vpop.f32.mrf.mxu1  ;;  %3374 = vmatmul.msk.f32.gmra.mxu3 %vm1476_vm1, %v1439_v45  ;;  %v259_v45 = vld [vmem:[%s3692_s17 + $0x218] sm:$0xff]  ;;  %v337_v47 = vld [vmem:[%s3692_s17 + $0x488] sm:$0xff] }
 0x207   : > { %v2465_v53 = vmax.f32 %v2052_v52, 0.0 }
 0x208   : > { %3156 = vmatmul.msk.f32.gmra.mxu0 %vm357_vm0, %v253_v48  ;;  %3234 = vmatmul.msk.f32.gmra.mxu2 %vm357_vm0, %v331_v49 }
 0x209   : > { %2622 = vst.msk [vmem:[%s3870_s12 + $0xe8] sm:$0xff] %vm357_vm0, %v2465_v53  ;;  %3297 = vmatmul.msk.f32.gmra.mxu1 %vm1476_vm1, %v1362_v50  ;;  %v2283_v54 = vpop.f32.mrf.mxu3 }
 0x20a   : > { %v2542_v55 = vmax.f32 %v2283_v54, 0.0 }
 0x20b   : > { %v1215_v56 = vpop.f32.mrf.mxu2 }
 0x20c   : > { %2699 = vst.msk [vmem:[%s3870_s12 + $0x350] sm:$0xff] %vm357_vm0, %v2542_v55  ;;  %v1440_v57 = vmax.f32 %v1215_v56, 0.0 }
 0x20d   : > { %v984_v58 = vpop.f32.mrf.mxu0 }
 0x20e   : > { %v1363_v61 = vmax.f32 %v984_v58, 0.0  ;;  %v2055_v62 = vpop.f32.mrf.mxu1  ;;  %3375 = vmatmul.msk.f32.gmra.mxu3 %vm1476_vm1, %v1440_v57  ;;  %v260_v57 = vld [vmem:[%s3692_s17 + $0x220] sm:$0xff]  ;;  %v338_v58 = vld [vmem:[%s3692_s17 + $0x490] sm:$0xff] }
 0x20f   : > { %v2466_v63 = vmax.f32 %v2055_v62, 0.0 }
 0x210   : > { %3157 = vmatmul.msk.f32.gmra.mxu0 %vm357_vm0, %v254_v59  ;;  %3235 = vmatmul.msk.f32.gmra.mxu2 %vm357_vm0, %v332_v60 }
 0x211   : > { %2623 = vst.msk [vmem:[%s3870_s12 + $0xf0] sm:$0xff] %vm357_vm0, %v2466_v63  ;;  %3298 = vmatmul.msk.f32.gmra.mxu1 %vm1476_vm1, %v1363_v61  ;;  %v2286_v0 = vpop.f32.mrf.mxu3 }
 0x212   : > { %v2543_v1 = vmax.f32 %v2286_v0, 0.0 }
 0x213   : > { %v1218_v2 = vpop.f32.mrf.mxu2 }
 0x214   : > { %2700 = vst.msk [vmem:[%s3870_s12 + $0x358] sm:$0xff] %vm357_vm0, %v2543_v1  ;;  %v1441_v3 = vmax.f32 %v1218_v2, 0.0 }
 0x215   : > { %v987_v4 = vpop.f32.mrf.mxu0 }
 0x216   : > { %v1364_v7 = vmax.f32 %v987_v4, 0.0  ;;  %v2058_v8 = vpop.f32.mrf.mxu1  ;;  %3376 = vmatmul.msk.f32.gmra.mxu3 %vm1476_vm1, %v1441_v3  ;;  %v261_v3 = vld [vmem:[%s3692_s17 + $0x228] sm:$0xff]  ;;  %v339_v4 = vld [vmem:[%s3692_s17 + $0x498] sm:$0xff] }
 0x217   : > { %v2467_v9 = vmax.f32 %v2058_v8, 0.0 }
 0x218   : > { %3158 = vmatmul.msk.f32.gmra.mxu0 %vm357_vm0, %v255_v5  ;;  %3236 = vmatmul.msk.f32.gmra.mxu2 %vm357_vm0, %v333_v6 }
 0x219   : > { %2624 = vst.msk [vmem:[%s3870_s12 + $0xf8] sm:$0xff] %vm357_vm0, %v2467_v9  ;;  %3299 = vmatmul.msk.f32.gmra.mxu1 %vm1476_vm1, %v1364_v7  ;;  %v2289_v10 = vpop.f32.mrf.mxu3 }
 0x21a   : > { %v2544_v11 = vmax.f32 %v2289_v10, 0.0 }
 0x21b   : > { %v1221_v12 = vpop.f32.mrf.mxu2 }
 0x21c   : > { %2701 = vst.msk [vmem:[%s3870_s12 + $0x360] sm:$0xff] %vm357_vm0, %v2544_v11  ;;  %v1442_v13 = vmax.f32 %v1221_v12, 0.0 }
 0x21d   : > { %v990_v14 = vpop.f32.mrf.mxu0 }
 0x21e   : > { %v1365_v17 = vmax.f32 %v990_v14, 0.0  ;;  %v2061_v18 = vpop.f32.mrf.mxu1  ;;  %3377 = vmatmul.msk.f32.gmra.mxu3 %vm1476_vm1, %v1442_v13  ;;  %v262_v13 = vld [vmem:[%s3692_s17 + $0x230] sm:$0xff]  ;;  %v340_v14 = vld [vmem:[%s3692_s17 + $0x4a0] sm:$0xff] }
 0x21f   : > { %v2468_v19 = vmax.f32 %v2061_v18, 0.0 }
 0x220   : > { %3159 = vmatmul.msk.f32.gmra.mxu0 %vm357_vm0, %v256_v15  ;;  %3237 = vmatmul.msk.f32.gmra.mxu2 %vm357_vm0, %v334_v16 }
 0x221   : > { %2625 = vst.msk [vmem:[%s3870_s12 + $0x100] sm:$0xff] %vm357_vm0, %v2468_v19  ;;  %3300 = vmatmul.msk.f32.gmra.mxu1 %vm1476_vm1, %v1365_v17  ;;  %v2292_v20 = vpop.f32.mrf.mxu3 }
 0x222   : > { %v2545_v21 = vmax.f32 %v2292_v20, 0.0 }
 0x223   : > { %v1224_v22 = vpop.f32.mrf.mxu2 }
 0x224   : > { %2702 = vst.msk [vmem:[%s3870_s12 + $0x368] sm:$0xff] %vm357_vm0, %v2545_v21  ;;  %v1443_v23 = vmax.f32 %v1224_v22, 0.0 }
 0x225   : > { %v993_v24 = vpop.f32.mrf.mxu0 }
 0x226   : > { %v1366_v27 = vmax.f32 %v993_v24, 0.0  ;;  %v2064_v28 = vpop.f32.mrf.mxu1  ;;  %3378 = vmatmul.msk.f32.gmra.mxu3 %vm1476_vm1, %v1443_v23  ;;  %v263_v23 = vld [vmem:[%s3692_s17 + $0x238] sm:$0xff]  ;;  %v341_v24 = vld [vmem:[%s3692_s17 + $0x4a8] sm:$0xff] }
 0x227   : > { %v2469_v29 = vmax.f32 %v2064_v28, 0.0 }
 0x228   : > { %3160 = vmatmul.msk.f32.gmra.mxu0 %vm357_vm0, %v257_v25  ;;  %3238 = vmatmul.msk.f32.gmra.mxu2 %vm357_vm0, %v335_v26 }
 0x229   : > { %2626 = vst.msk [vmem:[%s3870_s12 + $0x108] sm:$0xff] %vm357_vm0, %v2469_v29  ;;  %3301 = vmatmul.msk.f32.gmra.mxu1 %vm1476_vm1, %v1366_v27  ;;  %v2295_v30 = vpop.f32.mrf.mxu3 }
 0x22a   : > { %v2546_v31 = vmax.f32 %v2295_v30, 0.0 }
 0x22b   : > { %v1227_v32 = vpop.f32.mrf.mxu2 }
 0x22c   : > { %2703 = vst.msk [vmem:[%s3870_s12 + $0x370] sm:$0xff] %vm357_vm0, %v2546_v31  ;;  %v1444_v33 = vmax.f32 %v1227_v32, 0.0 }
 0x22d   : > { %v996_v34 = vpop.f32.mrf.mxu0 }
 0x22e   : > { %v1367_v37 = vmax.f32 %v996_v34, 0.0  ;;  %v2067_v38 = vpop.f32.mrf.mxu1  ;;  %3379 = vmatmul.msk.f32.gmra.mxu3 %vm1476_vm1, %v1444_v33  ;;  %v264_v33 = vld [vmem:[%s3692_s17 + $0x240] sm:$0xff]  ;;  %v342_v34 = vld [vmem:[%s3692_s17 + $0x4b0] sm:$0xff] }
 0x22f   : > { %v2470_v39 = vmax.f32 %v2067_v38, 0.0 }
 0x230   : > { %3161 = vmatmul.msk.f32.gmra.mxu0 %vm357_vm0, %v258_v35  ;;  %3239 = vmatmul.msk.f32.gmra.mxu2 %vm357_vm0, %v336_v36 }
 0x231   : > { %2627 = vst.msk [vmem:[%s3870_s12 + $0x110] sm:$0xff] %vm357_vm0, %v2470_v39  ;;  %3302 = vmatmul.msk.f32.gmra.mxu1 %vm1476_vm1, %v1367_v37  ;;  %v2298_v40 = vpop.f32.mrf.mxu3 }
 0x232   : > { %v2547_v41 = vmax.f32 %v2298_v40, 0.0 }
 0x233   : > { %v1230_v42 = vpop.f32.mrf.mxu2 }
 0x234   : > { %2704 = vst.msk [vmem:[%s3870_s12 + $0x378] sm:$0xff] %vm357_vm0, %v2547_v41  ;;  %v1445_v43 = vmax.f32 %v1230_v42, 0.0 }
 0x235   : > { %v999_v44 = vpop.f32.mrf.mxu0 }
 0x236   : > { %v1368_v48 = vmax.f32 %v999_v44, 0.0  ;;  %v2070_v49 = vpop.f32.mrf.mxu1  ;;  %3380 = vmatmul.msk.f32.gmra.mxu3 %vm1476_vm1, %v1445_v43  ;;  %v265_v43 = vld [vmem:[%s3692_s17 + $0x248] sm:$0xff]  ;;  %v343_v44 = vld [vmem:[%s3692_s17 + $0x4b8] sm:$0xff] }
 0x237   : > { %v2471_v50 = vmax.f32 %v2070_v49, 0.0 }
 0x238   : > { %3162 = vmatmul.msk.f32.gmra.mxu0 %vm357_vm0, %v259_v45  ;;  %3240 = vmatmul.msk.f32.gmra.mxu2 %vm357_vm0, %v337_v47 }
 0x239   : > { %2628 = vst.msk [vmem:[%s3870_s12 + $0x118] sm:$0xff] %vm357_vm0, %v2471_v50  ;;  %3303 = vmatmul.msk.f32.gmra.mxu1 %vm1476_vm1, %v1368_v48  ;;  %v2301_v52 = vpop.f32.mrf.mxu3 }
 0x23a   : > { %v2548_v53 = vmax.f32 %v2301_v52, 0.0 }
 0x23b   : > { %v1233_v54 = vpop.f32.mrf.mxu2 }
 0x23c   : > { %2705 = vst.msk [vmem:[%s3870_s12 + $0x380] sm:$0xff] %vm357_vm0, %v2548_v53  ;;  %v1446_v55 = vmax.f32 %v1233_v54, 0.0 }
 0x23d   : > { %v1002_v56 = vpop.f32.mrf.mxu0 }
 0x23e   : > { %v1369_v59 = vmax.f32 %v1002_v56, 0.0  ;;  %v2073_v60 = vpop.f32.mrf.mxu1  ;;  %3381 = vmatmul.msk.f32.gmra.mxu3 %vm1476_vm1, %v1446_v55  ;;  %v266_v55 = vld [vmem:[%s3692_s17 + $0x250] sm:$0xff]  ;;  %v344_v56 = vld [vmem:[%s3692_s17 + $0x4c0] sm:$0xff] }
 0x23f   : > { %v2472_v61 = vmax.f32 %v2073_v60, 0.0 }
 0x240   : > { %3163 = vmatmul.msk.f32.gmra.mxu0 %vm357_vm0, %v260_v57  ;;  %3241 = vmatmul.msk.f32.gmra.mxu2 %vm357_vm0, %v338_v58 }
 0x241   : > { %2629 = vst.msk [vmem:[%s3870_s12 + $0x120] sm:$0xff] %vm357_vm0, %v2472_v61  ;;  %3304 = vmatmul.msk.f32.gmra.mxu1 %vm1476_vm1, %v1369_v59  ;;  %v2304_v62 = vpop.f32.mrf.mxu3 }
 0x242   : > { %v2549_v63 = vmax.f32 %v2304_v62, 0.0 }
 0x243   : > { %v1236_v0 = vpop.f32.mrf.mxu2 }
 0x244   : > { %2706 = vst.msk [vmem:[%s3870_s12 + $0x388] sm:$0xff] %vm357_vm0, %v2549_v63  ;;  %v1447_v1 = vmax.f32 %v1236_v0, 0.0 }
 0x245   : > { %v1005_v2 = vpop.f32.mrf.mxu0 }
 0x246   : > { %v1370_v5 = vmax.f32 %v1005_v2, 0.0  ;;  %v2076_v6 = vpop.f32.mrf.mxu1  ;;  %3382 = vmatmul.msk.f32.gmra.mxu3 %vm1476_vm1, %v1447_v1  ;;  %v267_v1 = vld [vmem:[%s3692_s17 + $0x258] sm:$0xff]  ;;  %v345_v2 = vld [vmem:[%s3692_s17 + $0x4c8] sm:$0xff] }
 0x247   : > { %v2473_v7 = vmax.f32 %v2076_v6, 0.0 }
 0x248   : > { %3164 = vmatmul.msk.f32.gmra.mxu0 %vm357_vm0, %v261_v3  ;;  %3242 = vmatmul.msk.f32.gmra.mxu2 %vm357_vm0, %v339_v4 }
 0x249   : > { %2630 = vst.msk [vmem:[%s3870_s12 + $0x128] sm:$0xff] %vm357_vm0, %v2473_v7  ;;  %3305 = vmatmul.msk.f32.gmra.mxu1 %vm1476_vm1, %v1370_v5  ;;  %v2307_v8 = vpop.f32.mrf.mxu3 }
 0x24a   : > { %v2550_v9 = vmax.f32 %v2307_v8, 0.0 }
 0x24b   : > { %v1239_v10 = vpop.f32.mrf.mxu2 }
 0x24c   : > { %2707 = vst.msk [vmem:[%s3870_s12 + $0x390] sm:$0xff] %vm357_vm0, %v2550_v9  ;;  %v1448_v11 = vmax.f32 %v1239_v10, 0.0 }
 0x24d   : > { %v1008_v12 = vpop.f32.mrf.mxu0 }
 0x24e   : > { %v1371_v15 = vmax.f32 %v1008_v12, 0.0  ;;  %v2079_v16 = vpop.f32.mrf.mxu1  ;;  %3383 = vmatmul.msk.f32.gmra.mxu3 %vm1476_vm1, %v1448_v11  ;;  %v268_v11 = vld [vmem:[%s3692_s17 + $0x260] sm:$0xff]  ;;  %v346_v12 = vld [vmem:[%s3692_s17 + $0x4d0] sm:$0xff] }
 0x24f   : > { %v2474_v17 = vmax.f32 %v2079_v16, 0.0 }
 0x250   : > { %3165 = vmatmul.msk.f32.gmra.mxu0 %vm357_vm0, %v262_v13  ;;  %3243 = vmatmul.msk.f32.gmra.mxu2 %vm357_vm0, %v340_v14 }
 0x251   : > { %2631 = vst.msk [vmem:[%s3870_s12 + $0x130] sm:$0xff] %vm357_vm0, %v2474_v17  ;;  %3306 = vmatmul.msk.f32.gmra.mxu1 %vm1476_vm1, %v1371_v15  ;;  %v2310_v18 = vpop.f32.mrf.mxu3 }
 0x252   : > { %v2551_v19 = vmax.f32 %v2310_v18, 0.0 }
 0x253   : > { %v1242_v20 = vpop.f32.mrf.mxu2 }
 0x254   : > { %2708 = vst.msk [vmem:[%s3870_s12 + $0x398] sm:$0xff] %vm357_vm0, %v2551_v19  ;;  %v1449_v21 = vmax.f32 %v1242_v20, 0.0 }
 0x255   : > { %v1011_v22 = vpop.f32.mrf.mxu0 }
 0x256   : > { %v1372_v25 = vmax.f32 %v1011_v22, 0.0  ;;  %v2082_v26 = vpop.f32.mrf.mxu1  ;;  %3384 = vmatmul.msk.f32.gmra.mxu3 %vm1476_vm1, %v1449_v21  ;;  %v269_v21 = vld [vmem:[%s3692_s17 + $0x268] sm:$0xff]  ;;  %v347_v22 = vld [vmem:[%s3692_s17 + $0x4d8] sm:$0xff] }
 0x257   : > { %v2475_v27 = vmax.f32 %v2082_v26, 0.0 }
 0x258   : > { %3166 = vmatmul.msk.f32.gmra.mxu0 %vm357_vm0, %v263_v23  ;;  %3244 = vmatmul.msk.f32.gmra.mxu2 %vm357_vm0, %v341_v24 }
 0x259   : > { %2632 = vst.msk [vmem:[%s3870_s12 + $0x138] sm:$0xff] %vm357_vm0, %v2475_v27  ;;  %3307 = vmatmul.msk.f32.gmra.mxu1 %vm1476_vm1, %v1372_v25  ;;  %v2313_v28 = vpop.f32.mrf.mxu3 }
 0x25a   : > { %v2552_v29 = vmax.f32 %v2313_v28, 0.0 }
 0x25b   : > { %v1245_v30 = vpop.f32.mrf.mxu2 }
 0x25c   : > { %2709 = vst.msk [vmem:[%s3870_s12 + $0x3a0] sm:$0xff] %vm357_vm0, %v2552_v29  ;;  %v1450_v31 = vmax.f32 %v1245_v30, 0.0 }
 0x25d   : > { %v1014_v32 = vpop.f32.mrf.mxu0 }
 0x25e   : > { %v1373_v35 = vmax.f32 %v1014_v32, 0.0  ;;  %v2085_v36 = vpop.f32.mrf.mxu1  ;;  %3385 = vmatmul.msk.f32.gmra.mxu3 %vm1476_vm1, %v1450_v31  ;;  %v348_v31 = vld [vmem:[%s3692_s17 + $0x4e0] sm:$0xff] }
 0x25f   : > { %v2476_v37 = vmax.f32 %v2085_v36, 0.0 }
 0x260   : > { %3167 = vmatmul.msk.f32.gmra.mxu0 %vm357_vm0, %v264_v33  ;;  %3245 = vmatmul.msk.f32.gmra.mxu2 %vm357_vm0, %v342_v34 }
 0x261   : > { %2633 = vst.msk [vmem:[%s3870_s12 + $0x140] sm:$0xff] %vm357_vm0, %v2476_v37  ;;  %3308 = vmatmul.msk.f32.gmra.mxu1 %vm1476_vm1, %v1373_v35  ;;  %v2316_v38 = vpop.f32.mrf.mxu3 }
 0x262   : > { %v2553_v39 = vmax.f32 %v2316_v38, 0.0 }
 0x263   : > { %v1248_v40 = vpop.f32.mrf.mxu2 }
 0x264   : > { %2710 = vst.msk [vmem:[%s3870_s12 + $0x3a8] sm:$0xff] %vm357_vm0, %v2553_v39  ;;  %v1451_v41 = vmax.f32 %v1248_v40, 0.0 }
 0x265   : > { %v1017_v42 = vpop.f32.mrf.mxu0 }
 0x266   : > { %v1374_v45 = vmax.f32 %v1017_v42, 0.0  ;;  %v2088_v47 = vpop.f32.mrf.mxu1  ;;  %3386 = vmatmul.msk.f32.gmra.mxu3 %vm1476_vm1, %v1451_v41 }
 0x267   : > { %v2477_v48 = vmax.f32 %v2088_v47, 0.0 }
 0x268   : > { %3168 = vmatmul.msk.f32.gmra.mxu0 %vm357_vm0, %v265_v43  ;;  %3246 = vmatmul.msk.f32.gmra.mxu2 %vm357_vm0, %v343_v44 }
 0x269   : > { %2634 = vst.msk [vmem:[%s3870_s12 + $0x148] sm:$0xff] %vm357_vm0, %v2477_v48  ;;  %3309 = vmatmul.msk.f32.gmra.mxu1 %vm1476_vm1, %v1374_v45  ;;  %v2319_v49 = vpop.f32.mrf.mxu3 }
 0x26a   : > { %v2554_v50 = vmax.f32 %v2319_v49, 0.0 }
 0x26b   : > { %v1251_v52 = vpop.f32.mrf.mxu2 }
 0x26c   : > { %2711 = vst.msk [vmem:[%s3870_s12 + $0x3b0] sm:$0xff] %vm357_vm0, %v2554_v50  ;;  %v1452_v53 = vmax.f32 %v1251_v52, 0.0 }
 0x26d   : > { %v1020_v54 = vpop.f32.mrf.mxu0 }
 0x26e   : > { %v1375_v57 = vmax.f32 %v1020_v54, 0.0  ;;  %v2091_v58 = vpop.f32.mrf.mxu1  ;;  %3387 = vmatmul.msk.f32.gmra.mxu3 %vm1476_vm1, %v1452_v53 }
 0x26f   : > { %v2478_v59 = vmax.f32 %v2091_v58, 0.0 }
 0x270   : > { %3169 = vmatmul.msk.f32.gmra.mxu0 %vm357_vm0, %v266_v55  ;;  %3247 = vmatmul.msk.f32.gmra.mxu2 %vm357_vm0, %v344_v56 }
 0x271   : > { %2635 = vst.msk [vmem:[%s3870_s12 + $0x150] sm:$0xff] %vm357_vm0, %v2478_v59  ;;  %3310 = vmatmul.msk.f32.gmra.mxu1 %vm1476_vm1, %v1375_v57  ;;  %v2322_v60 = vpop.f32.mrf.mxu3 }
 0x272   : > { %v2555_v61 = vmax.f32 %v2322_v60, 0.0 }
 0x273   : > { %v1254_v62 = vpop.f32.mrf.mxu2 }
 0x274   : > { %2712 = vst.msk [vmem:[%s3870_s12 + $0x3b8] sm:$0xff] %vm357_vm0, %v2555_v61  ;;  %v1453_v63 = vmax.f32 %v1254_v62, 0.0 }
 0x275   : > { %v1023_v0 = vpop.f32.mrf.mxu0 }
 0x276   : > { %v1376_v3 = vmax.f32 %v1023_v0, 0.0  ;;  %v2094_v4 = vpop.f32.mrf.mxu1  ;;  %3388 = vmatmul.msk.f32.gmra.mxu3 %vm1476_vm1, %v1453_v63 }
 0x277   : > { %v2479_v5 = vmax.f32 %v2094_v4, 0.0 }
 0x278   : > { %3170 = vmatmul.msk.f32.gmra.mxu0 %vm357_vm0, %v267_v1  ;;  %3248 = vmatmul.msk.f32.gmra.mxu2 %vm357_vm0, %v345_v2 }
 0x279   : > { %2636 = vst.msk [vmem:[%s3870_s12 + $0x158] sm:$0xff] %vm357_vm0, %v2479_v5  ;;  %3311 = vmatmul.msk.f32.gmra.mxu1 %vm1476_vm1, %v1376_v3  ;;  %v2325_v6 = vpop.f32.mrf.mxu3 }
 0x27a   : > { %v2556_v7 = vmax.f32 %v2325_v6, 0.0 }
 0x27b   : > { %v1257_v8 = vpop.f32.mrf.mxu2 }
 0x27c   : > { %2713 = vst.msk [vmem:[%s3870_s12 + $0x3c0] sm:$0xff] %vm357_vm0, %v2556_v7  ;;  %v1454_v9 = vmax.f32 %v1257_v8, 0.0 }
 0x27d   : > { %v1026_v10 = vpop.f32.mrf.mxu0 }
 0x27e   : > { %v1377_v13 = vmax.f32 %v1026_v10, 0.0  ;;  %v2097_v14 = vpop.f32.mrf.mxu1  ;;  %3389 = vmatmul.msk.f32.gmra.mxu3 %vm1476_vm1, %v1454_v9 }
 0x27f   : > { %v2480_v15 = vmax.f32 %v2097_v14, 0.0 }
 0x280   : > { %3171 = vmatmul.msk.f32.gmra.mxu0 %vm357_vm0, %v268_v11  ;;  %3249 = vmatmul.msk.f32.gmra.mxu2 %vm357_vm0, %v346_v12 }
 0x281   : > { %2637 = vst.msk [vmem:[%s3870_s12 + $0x160] sm:$0xff] %vm357_vm0, %v2480_v15  ;;  %3312 = vmatmul.msk.f32.gmra.mxu1 %vm1476_vm1, %v1377_v13  ;;  %v2328_v16 = vpop.f32.mrf.mxu3 }
 0x282   : > { %v2557_v17 = vmax.f32 %v2328_v16, 0.0 }
 0x283   : > { %v1260_v18 = vpop.f32.mrf.mxu2 }
 0x284   : > { %2714 = vst.msk [vmem:[%s3870_s12 + $0x3c8] sm:$0xff] %vm357_vm0, %v2557_v17  ;;  %v1455_v19 = vmax.f32 %v1260_v18, 0.0 }
 0x285   : > { %v1029_v20 = vpop.f32.mrf.mxu0 }
 0x286   : > { %v1378_v23 = vmax.f32 %v1029_v20, 0.0  ;;  %v2100_v24 = vpop.f32.mrf.mxu1  ;;  %3390 = vmatmul.msk.f32.gmra.mxu3 %vm1476_vm1, %v1455_v19 }
 0x287   : > { %v2481_v25 = vmax.f32 %v2100_v24, 0.0 }
 0x288   : > { %3172 = vmatmul.msk.f32.gmra.mxu0 %vm357_vm0, %v269_v21  ;;  %3250 = vmatmul.msk.f32.gmra.mxu2 %vm357_vm0, %v347_v22 }
 0x289   : > { %2638 = vst.msk [vmem:[%s3870_s12 + $0x168] sm:$0xff] %vm357_vm0, %v2481_v25  ;;  %3313 = vmatmul.msk.f32.gmra.mxu1 %vm1476_vm1, %v1378_v23  ;;  %v2331_v26 = vpop.f32.mrf.mxu3 }
 0x28a   : > { %v2558_v27 = vmax.f32 %v2331_v26, 0.0 }
 0x28b   : > { %v1263_v28 = vpop.f32.mrf.mxu2 }
 0x28c   : > { %2715 = vst.msk [vmem:[%s3870_s12 + $0x3d0] sm:$0xff] %vm357_vm0, %v2558_v27  ;;  %v1456_v29 = vmax.f32 %v1263_v28, 0.0 }
 0x28d   : > { %v1032_v30 = vpop.f32.mrf.mxu0 }
 0x28e   : > { %v1379_v32 = vmax.f32 %v1032_v30, 0.0  ;;  %v2103_v33 = vpop.f32.mrf.mxu1  ;;  %3391 = vmatmul.msk.f32.gmra.mxu3 %vm1476_vm1, %v1456_v29 }
 0x28f   : > { %v2482_v34 = vmax.f32 %v2103_v33, 0.0 }
 0x290   : > { %3251 = vmatmul.msk.f32.gmra.mxu2 %vm357_vm0, %v348_v31 }
 0x291   : > { %2639 = vst.msk [vmem:[%s3870_s12 + $0x170] sm:$0xff] %vm357_vm0, %v2482_v34  ;;  %3314 = vmatmul.msk.f32.gmra.mxu1 %vm1476_vm1, %v1379_v32  ;;  %v2334_v35 = vpop.f32.mrf.mxu3 }
 0x292   : > { %v2559_v36 = vmax.f32 %v2334_v35, 0.0 }
 0x293   : > { %v1266_v37 = vpop.f32.mrf.mxu2 }
 0x294   : > { %2716 = vst.msk [vmem:[%s3870_s12 + $0x3d8] sm:$0xff] %vm357_vm0, %v2559_v36  ;;  %v1457_v38 = vmax.f32 %v1266_v37, 0.0 }
 0x295   : > { %v1035_v39 = vpop.f32.mrf.mxu0 }
 0x296   : > { %v1380_v40 = vmax.f32 %v1035_v39, 0.0  ;;  %v2106_v41 = vpop.f32.mrf.mxu1  ;;  %3392 = vmatmul.msk.f32.gmra.mxu3 %vm1476_vm1, %v1457_v38 }
 0x297   : > { %v2483_v42 = vmax.f32 %v2106_v41, 0.0 }
 0x299   : > { %2640 = vst.msk [vmem:[%s3870_s12 + $0x178] sm:$0xff] %vm357_vm0, %v2483_v42  ;;  %3315 = vmatmul.msk.f32.gmra.mxu1 %vm1476_vm1, %v1380_v40  ;;  %v2337_v43 = vpop.f32.mrf.mxu3 }
 0x29a   : > { %v2560_v44 = vmax.f32 %v2337_v43, 0.0 }
 0x29b   : > { %v1269_v45 = vpop.f32.mrf.mxu2 }
 0x29c   : > { %2717 = vst.msk [vmem:[%s3870_s12 + $0x3e0] sm:$0xff] %vm357_vm0, %v2560_v44  ;;  %v1458_v47 = vmax.f32 %v1269_v45, 0.0 }
 0x29d   : > { %v1038_v48 = vpop.f32.mrf.mxu0 }
 0x29e   : > { %v1381_v49 = vmax.f32 %v1038_v48, 0.0  ;;  %v2109_v50 = vpop.f32.mrf.mxu1  ;;  %3393 = vmatmul.msk.f32.gmra.mxu3 %vm1476_vm1, %v1458_v47 }
 0x29f   : > { %v2484_v52 = vmax.f32 %v2109_v50, 0.0 }
 0x2a1   : > { %2641 = vst.msk [vmem:[%s3870_s12 + $0x180] sm:$0xff] %vm357_vm0, %v2484_v52  ;;  %3316 = vmatmul.msk.f32.gmra.mxu1 %vm1476_vm1, %v1381_v49  ;;  %v2340_v53 = vpop.f32.mrf.mxu3 }
 0x2a2   : > { %v2561_v54 = vmax.f32 %v2340_v53, 0.0 }
 0x2a3   : > { %v1272_v55 = vpop.f32.mrf.mxu2 }
 0x2a4   : > { %2718 = vst.msk [vmem:[%s3870_s12 + $0x3e8] sm:$0xff] %vm357_vm0, %v2561_v54  ;;  %v1459_v56 = vmax.f32 %v1272_v55, 0.0 }
 0x2a5   : > { %v1041_v57 = vpop.f32.mrf.mxu0 }
 0x2a6   : > { %v1382_v58 = vmax.f32 %v1041_v57, 0.0  ;;  %v2112_v59 = vpop.f32.mrf.mxu1  ;;  %3394 = vmatmul.msk.f32.gmra.mxu3 %vm1476_vm1, %v1459_v56 }
 0x2a7   : > { %v2485_v60 = vmax.f32 %v2112_v59, 0.0 }
 0x2a9   : > { %2642 = vst.msk [vmem:[%s3870_s12 + $0x188] sm:$0xff] %vm357_vm0, %v2485_v60  ;;  %3317 = vmatmul.msk.f32.gmra.mxu1 %vm1476_vm1, %v1382_v58  ;;  %v2343_v61 = vpop.f32.mrf.mxu3 }
 0x2aa   : > { %v2562_v62 = vmax.f32 %v2343_v61, 0.0 }
 0x2ab   : > { %v1275_v63 = vpop.f32.mrf.mxu2 }
 0x2ac   : > { %2719 = vst.msk [vmem:[%s3870_s12 + $0x3f0] sm:$0xff] %vm357_vm0, %v2562_v62  ;;  %v1460_v0 = vmax.f32 %v1275_v63, 0.0 }
 0x2ad   : > { %v1044_v1 = vpop.f32.mrf.mxu0 }
 0x2ae   : > { %v1383_v2 = vmax.f32 %v1044_v1, 0.0  ;;  %v2115_v3 = vpop.f32.mrf.mxu1  ;;  %3395 = vmatmul.msk.f32.gmra.mxu3 %vm1476_vm1, %v1460_v0 }
 0x2af   : > { %v2486_v4 = vmax.f32 %v2115_v3, 0.0 }
 0x2b1   : > { %2643 = vst.msk [vmem:[%s3870_s12 + $0x190] sm:$0xff] %vm357_vm0, %v2486_v4  ;;  %3318 = vmatmul.msk.f32.gmra.mxu1 %vm1476_vm1, %v1383_v2  ;;  %v2346_v5 = vpop.f32.mrf.mxu3 }
 0x2b2   : > { %v2563_v6 = vmax.f32 %v2346_v5, 0.0 }
 0x2b3   : > { %v1278_v7 = vpop.f32.mrf.mxu2 }
 0x2b4   : > { %2720 = vst.msk [vmem:[%s3870_s12 + $0x3f8] sm:$0xff] %vm357_vm0, %v2563_v6  ;;  %v1461_v8 = vmax.f32 %v1278_v7, 0.0 }
 0x2b5   : > { %v1047_v9 = vpop.f32.mrf.mxu0 }
 0x2b6   : > { %v1384_v10 = vmax.f32 %v1047_v9, 0.0  ;;  %v2118_v11 = vpop.f32.mrf.mxu1  ;;  %3396 = vmatmul.msk.f32.gmra.mxu3 %vm1476_vm1, %v1461_v8 }
 0x2b7   : > { %v2487_v12 = vmax.f32 %v2118_v11, 0.0 }
 0x2b9   : > { %2644 = vst.msk [vmem:[%s3870_s12 + $0x198] sm:$0xff] %vm357_vm0, %v2487_v12  ;;  %3319 = vmatmul.msk.f32.gmra.mxu1 %vm1476_vm1, %v1384_v10  ;;  %v2349_v13 = vpop.f32.mrf.mxu3 }
 0x2ba   : > { %v2564_v14 = vmax.f32 %v2349_v13, 0.0 }
 0x2bb   : > { %v1281_v15 = vpop.f32.mrf.mxu2 }
 0x2bc   : > { %2721 = vst.msk [vmem:[%s3870_s12 + $0x400] sm:$0xff] %vm357_vm0, %v2564_v14  ;;  %v1462_v16 = vmax.f32 %v1281_v15, 0.0 }
 0x2bd   : > { %v1050_v17 = vpop.f32.mrf.mxu0 }
 0x2be   : > { %v1385_v18 = vmax.f32 %v1050_v17, 0.0  ;;  %v2121_v19 = vpop.f32.mrf.mxu1  ;;  %3397 = vmatmul.msk.f32.gmra.mxu3 %vm1476_vm1, %v1462_v16 }
 0x2bf   : > { %v2488_v20 = vmax.f32 %v2121_v19, 0.0 }
 0x2c1   : > { %2645 = vst.msk [vmem:[%s3870_s12 + $0x1a0] sm:$0xff] %vm357_vm0, %v2488_v20  ;;  %3320 = vmatmul.msk.f32.gmra.mxu1 %vm1476_vm1, %v1385_v18  ;;  %v2352_v21 = vpop.f32.mrf.mxu3 }
 0x2c2   : > { %v2565_v22 = vmax.f32 %v2352_v21, 0.0 }
 0x2c3   : > { %v1284_v23 = vpop.f32.mrf.mxu2 }
 0x2c4   : > { %2722 = vst.msk [vmem:[%s3870_s12 + $0x408] sm:$0xff] %vm357_vm0, %v2565_v22  ;;  %v1463_v24 = vmax.f32 %v1284_v23, 0.0 }
 0x2c5   : > { %v1053_v25 = vpop.f32.mrf.mxu0 }
 0x2c6   : > { %v1386_v26 = vmax.f32 %v1053_v25, 0.0  ;;  %v2124_v27 = vpop.f32.mrf.mxu1  ;;  %3398 = vmatmul.msk.f32.gmra.mxu3 %vm1476_vm1, %v1463_v24 }
 0x2c7   : > { %v2489_v28 = vmax.f32 %v2124_v27, 0.0 }
 0x2c9   : > { %2646 = vst.msk [vmem:[%s3870_s12 + $0x1a8] sm:$0xff] %vm357_vm0, %v2489_v28  ;;  %3321 = vmatmul.msk.f32.gmra.mxu1 %vm1476_vm1, %v1386_v26  ;;  %v2355_v29 = vpop.f32.mrf.mxu3 }
 0x2ca   : > { %v2566_v30 = vmax.f32 %v2355_v29, 0.0 }
 0x2cb   : > { %v1287_v31 = vpop.f32.mrf.mxu2 }
 0x2cc   : > { %2723 = vst.msk [vmem:[%s3870_s12 + $0x410] sm:$0xff] %vm357_vm0, %v2566_v30  ;;  %v1464_v32 = vmax.f32 %v1287_v31, 0.0 }
 0x2cd   : > { %v1056_v33 = vpop.f32.mrf.mxu0 }
 0x2ce   : > { %v1387_v34 = vmax.f32 %v1056_v33, 0.0  ;;  %v2127_v35 = vpop.f32.mrf.mxu1  ;;  %3399 = vmatmul.msk.f32.gmra.mxu3 %vm1476_vm1, %v1464_v32 }
 0x2cf   : > { %v2490_v36 = vmax.f32 %v2127_v35, 0.0 }
 0x2d1   : > { %2647 = vst.msk [vmem:[%s3870_s12 + $0x1b0] sm:$0xff] %vm357_vm0, %v2490_v36  ;;  %3322 = vmatmul.msk.f32.gmra.mxu1 %vm1476_vm1, %v1387_v34  ;;  %v2358_v37 = vpop.f32.mrf.mxu3  ;;  %v1395_v36 = vmax.f32 %v3772_v46, 0.0  ;;  %v1396_v46 = vmax.f32 %v3779_v51, 0.0 }
 0x2d2   : > { %v2567_v38 = vmax.f32 %v2358_v37, 0.0 }
 0x2d3   : > { %v1290_v39 = vpop.f32.mrf.mxu2 }
 0x2d4   : > { %2724 = vst.msk [vmem:[%s3870_s12 + $0x418] sm:$0xff] %vm357_vm0, %v2567_v38  ;;  %v1465_v40 = vmax.f32 %v1290_v39, 0.0 }
 0x2d5   : > { %v1059_v41 = vpop.f32.mrf.mxu0 }
 0x2d6   : > { %v1388_v42 = vmax.f32 %v1059_v41, 0.0  ;;  %v2130_v43 = vpop.f32.mrf.mxu1  ;;  %3400 = vmatmul.msk.f32.gmra.mxu3 %vm1476_vm1, %v1465_v40 }
 0x2d7   : > { %v2491_v44 = vmax.f32 %v2130_v43, 0.0 }
 0x2d9   : > { %2648 = vst.msk [vmem:[%s3870_s12 + $0x1b8] sm:$0xff] %vm357_vm0, %v2491_v44  ;;  %3323 = vmatmul.msk.f32.gmra.mxu1 %vm1476_vm1, %v1388_v42  ;;  %v2361_v45 = vpop.f32.mrf.mxu3 }
 0x2da   : > { %v2568_v47 = vmax.f32 %v2361_v45, 0.0 }
 0x2db   : > { %v1293_v48 = vpop.f32.mrf.mxu2 }
 0x2dc   : > { %2725 = vst.msk [vmem:[%s3870_s12 + $0x420] sm:$0xff] %vm357_vm0, %v2568_v47  ;;  %v1466_v49 = vmax.f32 %v1293_v48, 0.0 }
 0x2dd   : > { %v1062_v50 = vpop.f32.mrf.mxu0 }
 0x2de   : > { %v1389_v52 = vmax.f32 %v1062_v50, 0.0  ;;  %v2133_v53 = vpop.f32.mrf.mxu1  ;;  %3401 = vmatmul.msk.f32.gmra.mxu3 %vm1476_vm1, %v1466_v49 }
 0x2df   : > { %v2492_v54 = vmax.f32 %v2133_v53, 0.0 }
 0x2e1   : > { %2649 = vst.msk [vmem:[%s3870_s12 + $0x1c0] sm:$0xff] %vm357_vm0, %v2492_v54  ;;  %3324 = vmatmul.msk.f32.gmra.mxu1 %vm1476_vm1, %v1389_v52  ;;  %v2364_v55 = vpop.f32.mrf.mxu3 }
 0x2e2   : > { %v2569_v56 = vmax.f32 %v2364_v55, 0.0 }
 0x2e3   : > { %v1296_v57 = vpop.f32.mrf.mxu2 }
 0x2e4   : > { %2726 = vst.msk [vmem:[%s3870_s12 + $0x428] sm:$0xff] %vm357_vm0, %v2569_v56  ;;  %v1467_v58 = vmax.f32 %v1296_v57, 0.0 }
 0x2e5   : > { %v1065_v59 = vpop.f32.mrf.mxu0 }
 0x2e6   : > { %v1390_v60 = vmax.f32 %v1065_v59, 0.0  ;;  %v2136_v61 = vpop.f32.mrf.mxu1  ;;  %3402 = vmatmul.msk.f32.gmra.mxu3 %vm1476_vm1, %v1467_v58 }
 0x2e7   : > { %v2493_v62 = vmax.f32 %v2136_v61, 0.0 }
 0x2e9   : > { %2650 = vst.msk [vmem:[%s3870_s12 + $0x1c8] sm:$0xff] %vm357_vm0, %v2493_v62  ;;  %3325 = vmatmul.msk.f32.gmra.mxu1 %vm1476_vm1, %v1390_v60  ;;  %v2367_v63 = vpop.f32.mrf.mxu3 }
 0x2ea   : > { %v2570_v0 = vmax.f32 %v2367_v63, 0.0 }
 0x2eb   : > { %v1299_v1 = vpop.f32.mrf.mxu2 }
 0x2ec   : > { %2727 = vst.msk [vmem:[%s3870_s12 + $0x430] sm:$0xff] %vm357_vm0, %v2570_v0  ;;  %v1468_v2 = vmax.f32 %v1299_v1, 0.0 }
 0x2ed   : > { %v1068_v3 = vpop.f32.mrf.mxu0 }
 0x2ee   : > { %v1391_v4 = vmax.f32 %v1068_v3, 0.0  ;;  %v2139_v5 = vpop.f32.mrf.mxu1  ;;  %3403 = vmatmul.msk.f32.gmra.mxu3 %vm1476_vm1, %v1468_v2 }
 0x2ef   : > { %v2494_v6 = vmax.f32 %v2139_v5, 0.0 }
 0x2f1   : > { %2651 = vst.msk [vmem:[%s3870_s12 + $0x1d0] sm:$0xff] %vm357_vm0, %v2494_v6  ;;  %3326 = vmatmul.msk.f32.gmra.mxu1 %vm1476_vm1, %v1391_v4  ;;  %v2370_v7 = vpop.f32.mrf.mxu3 }
 0x2f2   : > { %v2571_v8 = vmax.f32 %v2370_v7, 0.0 }
 0x2f3   : > { %v1302_v9 = vpop.f32.mrf.mxu2 }
 0x2f4   : > { %2728 = vst.msk [vmem:[%s3870_s12 + $0x438] sm:$0xff] %vm357_vm0, %v2571_v8  ;;  %v1469_v10 = vmax.f32 %v1302_v9, 0.0 }
 0x2f5   : > { %v1071_v11 = vpop.f32.mrf.mxu0 }
 0x2f6   : > { %v1392_v12 = vmax.f32 %v1071_v11, 0.0  ;;  %v2142_v13 = vpop.f32.mrf.mxu1  ;;  %3404 = vmatmul.msk.f32.gmra.mxu3 %vm1476_vm1, %v1469_v10 }
 0x2f7   : > { %v2495_v14 = vmax.f32 %v2142_v13, 0.0 }
 0x2f9   : > { %2652 = vst.msk [vmem:[%s3870_s12 + $0x1d8] sm:$0xff] %vm357_vm0, %v2495_v14  ;;  %3327 = vmatmul.msk.f32.gmra.mxu1 %vm1476_vm1, %v1392_v12  ;;  %v2373_v15 = vpop.f32.mrf.mxu3 }
 0x2fa   : > { %v2572_v16 = vmax.f32 %v2373_v15, 0.0 }
 0x2fb   : > { %v1305_v17 = vpop.f32.mrf.mxu2 }
 0x2fc   : > { %2729 = vst.msk [vmem:[%s3870_s12 + $0x440] sm:$0xff] %vm357_vm0, %v2572_v16  ;;  %v1470_v18 = vmax.f32 %v1305_v17, 0.0 }
 0x2fd   : > { %v1074_v19 = vpop.f32.mrf.mxu0 }
 0x2fe   : > { %v1393_v20 = vmax.f32 %v1074_v19, 0.0  ;;  %v2145_v21 = vpop.f32.mrf.mxu1  ;;  %3405 = vmatmul.msk.f32.gmra.mxu3 %vm1476_vm1, %v1470_v18 }
 0x2ff   : > { %v2496_v22 = vmax.f32 %v2145_v21, 0.0 }
 0x301   : > { %2653 = vst.msk [vmem:[%s3870_s12 + $0x1e0] sm:$0xff] %vm357_vm0, %v2496_v22  ;;  %3328 = vmatmul.msk.f32.gmra.mxu1 %vm1476_vm1, %v1393_v20  ;;  %v2376_v23 = vpop.f32.mrf.mxu3 }
 0x302   : > { %v2573_v24 = vmax.f32 %v2376_v23, 0.0 }
 0x303   : > { %v1308_v25 = vpop.f32.mrf.mxu2 }
 0x304   : > { %2730 = vst.msk [vmem:[%s3870_s12 + $0x448] sm:$0xff] %vm357_vm0, %v2573_v24  ;;  %v1471_v26 = vmax.f32 %v1308_v25, 0.0 }
 0x305   : > { %v1077_v27 = vpop.f32.mrf.mxu0 }
 0x306   : > { %v1394_v28 = vmax.f32 %v1077_v27, 0.0  ;;  %v2148_v29 = vpop.f32.mrf.mxu1  ;;  %3406 = vmatmul.msk.f32.gmra.mxu3 %vm1476_vm1, %v1471_v26 }
 0x307   : > { %v2497_v30 = vmax.f32 %v2148_v29, 0.0 }
 0x309   : > { %2654 = vst.msk [vmem:[%s3870_s12 + $0x1e8] sm:$0xff] %vm357_vm0, %v2497_v30  ;;  %3329 = vmatmul.msk.f32.gmra.mxu1 %vm1476_vm1, %v1394_v28  ;;  %v2379_v31 = vpop.f32.mrf.mxu3 }
 0x30a   : > { %v2574_v32 = vmax.f32 %v2379_v31, 0.0 }
 0x30b   : > { %v1311_v33 = vpop.f32.mrf.mxu2 }
 0x30c   : > { %2731 = vst.msk [vmem:[%s3870_s12 + $0x450] sm:$0xff] %vm357_vm0, %v2574_v32  ;;  %v1472_v34 = vmax.f32 %v1311_v33, 0.0 }
 0x30e   : > { %v2151_v35 = vpop.f32.mrf.mxu1  ;;  %3407 = vmatmul.msk.f32.gmra.mxu3 %vm1476_vm1, %v1472_v34 }
 0x30f   : > { %v2498_v37 = vmax.f32 %v2151_v35, 0.0 }
 0x311   : > { %2655 = vst.msk [vmem:[%s3870_s12 + $0x1f0] sm:$0xff] %vm357_vm0, %v2498_v37  ;;  %3330 = vmatmul.msk.f32.gmra.mxu1 %vm1476_vm1, %v1395_v36  ;;  %v2382_v38 = vpop.f32.mrf.mxu3 }
 0x312   : > { %v2575_v39 = vmax.f32 %v2382_v38, 0.0 }
 0x313   : > { %v1314_v40 = vpop.f32.mrf.mxu2 }
 0x314   : > { %2732 = vst.msk [vmem:[%s3870_s12 + $0x458] sm:$0xff] %vm357_vm0, %v2575_v39  ;;  %v1473_v41 = vmax.f32 %v1314_v40, 0.0 }
 0x316   : > { %v2154_v42 = vpop.f32.mrf.mxu1  ;;  %3408 = vmatmul.msk.f32.gmra.mxu3 %vm1476_vm1, %v1473_v41 }
 0x317   : > { %v2499_v43 = vmax.f32 %v2154_v42, 0.0 }
 0x319   : > { %2656 = vst.msk [vmem:[%s3870_s12 + $0x1f8] sm:$0xff] %vm357_vm0, %v2499_v43  ;;  %3331 = vmatmul.msk.f32.gmra.mxu1 %vm1476_vm1, %v1396_v46  ;;  %v2385_v44 = vpop.f32.mrf.mxu3 }
 0x31a   : > { %v2576_v45 = vmax.f32 %v2385_v44, 0.0 }
 0x31c   : > { %2733 = vst.msk [vmem:[%s3870_s12 + $0x460] sm:$0xff] %vm357_vm0, %v2576_v45 }
 0x31e   : > { %v2157_v47 = vpop.f32.mrf.mxu1 }
 0x31f   : > { %v2500_v48 = vmax.f32 %v2157_v47, 0.0 }
 0x321   : > { %2657 = vst.msk [vmem:[%s3870_s12 + $0x200] sm:$0xff] %vm357_vm0, %v2500_v48  ;;  %v2388_v49 = vpop.f32.mrf.mxu3 }
 0x322   : > { %v2577_v50 = vmax.f32 %v2388_v49, 0.0 }
 0x324   : > { %2734 = vst.msk [vmem:[%s3870_s12 + $0x468] sm:$0xff] %vm357_vm0, %v2577_v50 }
 0x326   : > { %v2160_v51 = vpop.f32.mrf.mxu1 }
 0x327   : > { %v2501_v52 = vmax.f32 %v2160_v51, 0.0 }
 0x329   : > { %2658 = vst.msk [vmem:[%s3870_s12 + $0x208] sm:$0xff] %vm357_vm0, %v2501_v52  ;;  %v2391_v53 = vpop.f32.mrf.mxu3 }
 0x32a   : > { %v2578_v54 = vmax.f32 %v2391_v53, 0.0 }
 0x32c   : > { %2735 = vst.msk [vmem:[%s3870_s12 + $0x470] sm:$0xff] %vm357_vm0, %v2578_v54 }
 0x32e   : > { %v2163_v55 = vpop.f32.mrf.mxu1 }
 0x32f   : > { %v2502_v56 = vmax.f32 %v2163_v55, 0.0 }
 0x331   : > { %2659 = vst.msk [vmem:[%s3870_s12 + $0x210] sm:$0xff] %vm357_vm0, %v2502_v56  ;;  %v2394_v57 = vpop.f32.mrf.mxu3 }
 0x332   : > { %v2579_v58 = vmax.f32 %v2394_v57, 0.0 }
 0x334   : > { %2736 = vst.msk [vmem:[%s3870_s12 + $0x478] sm:$0xff] %vm357_vm0, %v2579_v58 }
 0x336   : > { %v2166_v59 = vpop.f32.mrf.mxu1 }
 0x337   : > { %v2503_v60 = vmax.f32 %v2166_v59, 0.0 }
 0x339   : > { %2660 = vst.msk [vmem:[%s3870_s12 + $0x218] sm:$0xff] %vm357_vm0, %v2503_v60  ;;  %v2397_v61 = vpop.f32.mrf.mxu3 }
 0x33a   : > { %v2580_v62 = vmax.f32 %v2397_v61, 0.0 }
 0x33c   : > { %2737 = vst.msk [vmem:[%s3870_s12 + $0x480] sm:$0xff] %vm357_vm0, %v2580_v62 }
 0x33e   : > { %v2169_v63 = vpop.f32.mrf.mxu1 }
 0x33f   : > { %v2504_v0 = vmax.f32 %v2169_v63, 0.0 }
 0x341   : > { %2661 = vst.msk [vmem:[%s3870_s12 + $0x220] sm:$0xff] %vm357_vm0, %v2504_v0  ;;  %v2400_v1 = vpop.f32.mrf.mxu3 }
 0x342   : > { %v2581_v2 = vmax.f32 %v2400_v1, 0.0 }
 0x344   : > { %2738 = vst.msk [vmem:[%s3870_s12 + $0x488] sm:$0xff] %vm357_vm0, %v2581_v2 }
 0x346   : > { %v2172_v3 = vpop.f32.mrf.mxu1 }
 0x347   : > { %v2505_v4 = vmax.f32 %v2172_v3, 0.0 }
 0x349   : > { %2662 = vst.msk [vmem:[%s3870_s12 + $0x228] sm:$0xff] %vm357_vm0, %v2505_v4  ;;  %v2403_v5 = vpop.f32.mrf.mxu3 }
 0x34a   : > { %v2582_v6 = vmax.f32 %v2403_v5, 0.0 }
 0x34c   : > { %2739 = vst.msk [vmem:[%s3870_s12 + $0x490] sm:$0xff] %vm357_vm0, %v2582_v6 }
 0x34e   : > { %v2175_v7 = vpop.f32.mrf.mxu1 }
 0x34f   : > { %v2506_v8 = vmax.f32 %v2175_v7, 0.0 }
 0x351   : > { %2663 = vst.msk [vmem:[%s3870_s12 + $0x230] sm:$0xff] %vm357_vm0, %v2506_v8  ;;  %v2406_v9 = vpop.f32.mrf.mxu3 }
 0x352   : > { %v2583_v10 = vmax.f32 %v2406_v9, 0.0 }
 0x354   : > { %2740 = vst.msk [vmem:[%s3870_s12 + $0x498] sm:$0xff] %vm357_vm0, %v2583_v10 }
 0x356   : > { %v2178_v11 = vpop.f32.mrf.mxu1 }
 0x357   : > { %v2507_v12 = vmax.f32 %v2178_v11, 0.0 }
 0x359   : > { %2664 = vst.msk [vmem:[%s3870_s12 + $0x238] sm:$0xff] %vm357_vm0, %v2507_v12  ;;  %v2409_v13 = vpop.f32.mrf.mxu3 }
 0x35a   : > { %v2584_v14 = vmax.f32 %v2409_v13, 0.0 }
 0x35c   : > { %2741 = vst.msk [vmem:[%s3870_s12 + $0x4a0] sm:$0xff] %vm357_vm0, %v2584_v14 }
 0x35e   : > { %v2181_v15 = vpop.f32.mrf.mxu1 }
 0x35f   : > { %v2508_v16 = vmax.f32 %v2181_v15, 0.0 }
 0x361   : > { %2665 = vst.msk [vmem:[%s3870_s12 + $0x240] sm:$0xff] %vm357_vm0, %v2508_v16  ;;  %v2412_v17 = vpop.f32.mrf.mxu3 }
 0x362   : > { %v2585_v18 = vmax.f32 %v2412_v17, 0.0 }
 0x364   : > { %2742 = vst.msk [vmem:[%s3870_s12 + $0x4a8] sm:$0xff] %vm357_vm0, %v2585_v18 }
 0x366   : > { %v2184_v19 = vpop.f32.mrf.mxu1 }
 0x367   : > { %v2509_v20 = vmax.f32 %v2184_v19, 0.0 }
 0x369   : > { %2666 = vst.msk [vmem:[%s3870_s12 + $0x248] sm:$0xff] %vm357_vm0, %v2509_v20  ;;  %v2415_v21 = vpop.f32.mrf.mxu3 }
 0x36a   : > { %v2586_v22 = vmax.f32 %v2415_v21, 0.0 }
 0x36c   : > { %2743 = vst.msk [vmem:[%s3870_s12 + $0x4b0] sm:$0xff] %vm357_vm0, %v2586_v22 }
 0x36e   : > { %v2187_v23 = vpop.f32.mrf.mxu1 }
 0x36f   : > { %v2510_v24 = vmax.f32 %v2187_v23, 0.0 }
 0x371   : > { %2667 = vst.msk [vmem:[%s3870_s12 + $0x250] sm:$0xff] %vm357_vm0, %v2510_v24  ;;  %v2418_v25 = vpop.f32.mrf.mxu3 }
 0x372   : > { %v2587_v26 = vmax.f32 %v2418_v25, 0.0 }
 0x374   : > { %2744 = vst.msk [vmem:[%s3870_s12 + $0x4b8] sm:$0xff] %vm357_vm0, %v2587_v26 }
 0x376   : > { %v2190_v27 = vpop.f32.mrf.mxu1 }
 0x377   : > { %v2511_v28 = vmax.f32 %v2190_v27, 0.0 }
 0x379   : > { %2668 = vst.msk [vmem:[%s3870_s12 + $0x258] sm:$0xff] %vm357_vm0, %v2511_v28  ;;  %v2421_v29 = vpop.f32.mrf.mxu3 }
 0x37a   : > { %v2588_v30 = vmax.f32 %v2421_v29, 0.0 }
 0x37c   : > { %2745 = vst.msk [vmem:[%s3870_s12 + $0x4c0] sm:$0xff] %vm357_vm0, %v2588_v30 }
 0x37e   : > { %v2193_v31 = vpop.f32.mrf.mxu1 }
 0x37f   : > { %v2512_v32 = vmax.f32 %v2193_v31, 0.0 }
 0x381   : > { %2669 = vst.msk [vmem:[%s3870_s12 + $0x260] sm:$0xff] %vm357_vm0, %v2512_v32  ;;  %v2424_v33 = vpop.f32.mrf.mxu3 }
 0x382   : > { %v2589_v34 = vmax.f32 %v2424_v33, 0.0 }
 0x384   : > { %2746 = vst.msk [vmem:[%s3870_s12 + $0x4c8] sm:$0xff] %vm357_vm0, %v2589_v34 }
 0x386   : > { %v2196_v35 = vpop.f32.mrf.mxu1 }
 0x387   : > { %v2513_v36 = vmax.f32 %v2196_v35, 0.0 }
 0x389   : > { %2670 = vst.msk [vmem:[%s3870_s12 + $0x268] sm:$0xff] %vm357_vm0, %v2513_v36  ;;  %v2427_v37 = vpop.f32.mrf.mxu3 }
 0x38a   : > { %v2590_v38 = vmax.f32 %v2427_v37, 0.0 }
 0x38c   : > { %2747 = vst.msk [vmem:[%s3870_s12 + $0x4d0] sm:$0xff] %vm357_vm0, %v2590_v38 }
 0x38e   : > { %v2199_v39 = vpop.f32.mrf.mxu1 }
 0x38f   : > { %v2514_v40 = vmax.f32 %v2199_v39, 0.0 }
 0x391   : > { %2671 = vst.msk [vmem:[%s3870_s12 + $0x270] sm:$0xff] %vm357_vm0, %v2514_v40  ;;  %v2430_v41 = vpop.f32.mrf.mxu3 }
 0x392   : > { %v2591_v42 = vmax.f32 %v2430_v41, 0.0 }
 0x394   : > { %2748 = vst.msk [vmem:[%s3870_s12 + $0x4d8] sm:$0xff] %vm357_vm0, %v2591_v42 }
 0x396   : > { %v2202_v46 = vpop.f32.mrf.mxu1 }
 0x397   : > { %v2515_v43 = vmax.f32 %v2202_v46, 0.0 }
 0x398   : > { %2756 = sbr.rel (!%p3659_p4) target bundleno = 989 (0x3dd), region = 36 }
 0x399   : > { %2672 = vst.msk [vmem:[%s3870_s12 + $0x278] sm:$0xff] %vm357_vm0, %v2515_v43  ;;  %v2433_v44 = vpop.f32.mrf.mxu3 }
 0x39a   : > { %v2592_v45 = vmax.f32 %v2433_v44, 0.0 }
 0x39c   : > { %2749 = vst.msk [vmem:[%s3870_s12 + $0x4e0] sm:$0xff] %vm357_vm0, %v2592_v45 }
 0x39d   : > { %s4653_s29 = smov (!%p2759_p8, %s2758_s29), 157 }
 0x39e   : > { %s3409_s7 = sshll.u32 %s4653_s29, 3 }
 0x39f   : > { %p3412_p9 = scmp.eq.s32.totalorder %s3409_s7, 0 }
 0x3a0   : > { %s4510_s8 = sshrl.u32 (!%p3412_p9), %s4653_s29, 5 }
 0x3a1   : > { %2767 = sbr.rel (%p3412_p9) target bundleno = 989 (0x3dd), region = 40  ;;  %p3413_p10 = scmp.le.s32.totalorder (!%p3412_p9), %s4510_s8, 0 }
 0x3a6   : > { %3046 = sbr.rel (%p3413_p10) target bundleno = 972 (0x3cc), region = 116  ;;  %s4644_s15 = smov (!%p3413_p10), %s4504_s6 }
 0x3a7   : > { %s4645_s20 = smov (!%p3413_p10), %s3870_s12  ;;  %s4519_s25 = smov (!%p3413_p10), 0  }
 0x3a8   : > { %s4521_s9 = smov (!%p3413_p10), 0  }
 0x3ab LB: >> { %v2892_v47 = vld [vmem:[%s3588_s20] sm:$0xff]  ;;  %v2894_v48 = vld [vmem:[%s3588_s20 + $0x8] sm:$0xff]  ;;  %v2896_v49 = vld [vmem:[%s3588_s20 + $0x10] sm:$0xff]  ;;  %s2956_s10 = sadd.s32 1, %s3592_s25  ;;  %s2886_s9 = sadd.s32 1, %s3596_s9   ;;  %s3596_s9 = sphi %s4521_s9, %s2886_s9   ;;  %s3592_s25 = sphi %s4519_s25, %s4648_s25   ;;  %s3588_s20 = sphi %s4645_s20, %s4647_s20   ;;  %s3584_s15 = sphi %s4644_s15, %s4646_s15  }
 0x3ac   : >> { %2893 = vst [vmem:[%s3584_s15] sm:$0xff] %v2892_v47  ;;  %v2898_v50 = vld [vmem:[%s3588_s20 + $0x18] sm:$0xff]  ;;  %p2957_p11 = scmp.ge.s32.totalorder %s2956_s10, %s4510_s8  ;;  %v2900_v51 = vld [vmem:[%s3588_s20 + $0x20] sm:$0xff]  ;;  %v2902_v52 = vld [vmem:[%s3588_s20 + $0x28] sm:$0xff]  ;;  %p2885_p12 = scmp.ge.s32.totalorder %s2886_s9, %s4510_s8 }
 0x3ad   : >> { %2895 = vst [vmem:[%s3584_s15 + $0x8] sm:$0xff] %v2894_v48  ;;  %v2904_v53 = vld [vmem:[%s3588_s20 + $0x30] sm:$0xff]  ;;  %v2906_v54 = vld [vmem:[%s3588_s20 + $0x38] sm:$0xff]  ;;  %v2908_v55 = vld [vmem:[%s3588_s20 + $0x40] sm:$0xff] }
 0x3ae   : >> { %2897 = vst [vmem:[%s3584_s15 + $0x10] sm:$0xff] %v2896_v49  ;;  %s4655_s10 = smov (%p2957_p11, %s2956_s10), 0  ;;  %v2910_v56 = vld [vmem:[%s3588_s20 + $0x48] sm:$0xff]  ;;  %v2912_v57 = vld [vmem:[%s3588_s20 + $0x50] sm:$0xff]  ;;  %v2914_v58 = vld [vmem:[%s3588_s20 + $0x58] sm:$0xff] }
 0x3af   : >> { %2899 = vst [vmem:[%s3584_s15 + $0x18] sm:$0xff] %v2898_v50  ;;  %s3414_s11 = sshll.u32 %s4655_s10, 8  ;;  %v2916_v59 = vld [vmem:[%s3588_s20 + $0x60] sm:$0xff]  ;;  %v2918_v60 = vld [vmem:[%s3588_s20 + $0x68] sm:$0xff]  ;;  %v2920_v61 = vld [vmem:[%s3588_s20 + $0x70] sm:$0xff]  ;;  %s4648_s25 = smov %s4655_s10 }
 0x3b0   : >> { %2901 = vst [vmem:[%s3584_s15 + $0x20] sm:$0xff] %v2900_v51  ;;  %s4553_s14 = scalar_lea.vmem %s3870_s12, %s3414_s11 [#allocation2]   ;;  %s4556_s17 = scalar_lea.vmem %s4504_s6, %s3414_s11   ;;  %v2922_v62 = vld [vmem:[%s3588_s20 + $0x78] sm:$0xff]  ;;  %v2924_v63 = vld [vmem:[%s3588_s20 + $0x80] sm:$0xff]  ;;  %v2926_v0 = vld [vmem:[%s3588_s20 + $0x88] sm:$0xff] }
 0x3b1   : >> { %2903 = vst [vmem:[%s3584_s15 + $0x28] sm:$0xff] %v2902_v52  ;;  %v2928_v1 = vld [vmem:[%s3588_s20 + $0x90] sm:$0xff]  ;;  %v2930_v2 = vld [vmem:[%s3588_s20 + $0x98] sm:$0xff]  ;;  %v2932_v3 = vld [vmem:[%s3588_s20 + $0xa0] sm:$0xff] }
 0x3b2   : >> { %2905 = vst [vmem:[%s3584_s15 + $0x30] sm:$0xff] %v2904_v53  ;;  %v2934_v4 = vld [vmem:[%s3588_s20 + $0xa8] sm:$0xff]  ;;  %v2936_v5 = vld [vmem:[%s3588_s20 + $0xb0] sm:$0xff]  ;;  %v2938_v6 = vld [vmem:[%s3588_s20 + $0xb8] sm:$0xff] }
 0x3b3   : >> { %2907 = vst [vmem:[%s3584_s15 + $0x38] sm:$0xff] %v2906_v54  ;;  %v2940_v7 = vld [vmem:[%s3588_s20 + $0xc0] sm:$0xff]  ;;  %v2942_v8 = vld [vmem:[%s3588_s20 + $0xc8] sm:$0xff]  ;;  %v2944_v9 = vld [vmem:[%s3588_s20 + $0xd0] sm:$0xff] }
 0x3b4   : >> { %2909 = vst [vmem:[%s3584_s15 + $0x40] sm:$0xff] %v2908_v55  ;;  %v2946_v10 = vld [vmem:[%s3588_s20 + $0xd8] sm:$0xff]  ;;  %v2948_v11 = vld [vmem:[%s3588_s20 + $0xe0] sm:$0xff]  ;;  %v2950_v12 = vld [vmem:[%s3588_s20 + $0xe8] sm:$0xff] }
 0x3b5   : >> { %2911 = vst [vmem:[%s3584_s15 + $0x48] sm:$0xff] %v2910_v56  ;;  %v2952_v13 = vld [vmem:[%s3588_s20 + $0xf0] sm:$0xff]  ;;  %v2954_v14 = vld [vmem:[%s3588_s20 + $0xf8] sm:$0xff]  ;;  %s4647_s20 = smov %s4553_s14 }
 0x3b6   : >> { %2913 = vst [vmem:[%s3584_s15 + $0x50] sm:$0xff] %v2912_v57 }
 0x3b7   : >> { %2915 = vst [vmem:[%s3584_s15 + $0x58] sm:$0xff] %v2914_v58 }
 0x3b8   : >> { %2917 = vst [vmem:[%s3584_s15 + $0x60] sm:$0xff] %v2916_v59 }
 0x3b9   : >> { %2919 = vst [vmem:[%s3584_s15 + $0x68] sm:$0xff] %v2918_v60 }
 0x3ba   : >> { %2921 = vst [vmem:[%s3584_s15 + $0x70] sm:$0xff] %v2920_v61 }
 0x3bb   : >> { %2923 = vst [vmem:[%s3584_s15 + $0x78] sm:$0xff] %v2922_v62 }
 0x3bc   : >> { %2925 = vst [vmem:[%s3584_s15 + $0x80] sm:$0xff] %v2924_v63 }
 0x3bd   : >> { %2927 = vst [vmem:[%s3584_s15 + $0x88] sm:$0xff] %v2926_v0 }
 0x3be   : >> { %2929 = vst [vmem:[%s3584_s15 + $0x90] sm:$0xff] %v2928_v1 }
 0x3bf   : >> { %2931 = vst [vmem:[%s3584_s15 + $0x98] sm:$0xff] %v2930_v2 }
 0x3c0   : >> { %2933 = vst [vmem:[%s3584_s15 + $0xa0] sm:$0xff] %v2932_v3 }
 0x3c1   : >> { %2935 = vst [vmem:[%s3584_s15 + $0xa8] sm:$0xff] %v2934_v4 }
 0x3c2   : >> { %2937 = vst [vmem:[%s3584_s15 + $0xb0] sm:$0xff] %v2936_v5 }
 0x3c3   : >> { %2939 = vst [vmem:[%s3584_s15 + $0xb8] sm:$0xff] %v2938_v6 }
 0x3c4   : >> { %2941 = vst [vmem:[%s3584_s15 + $0xc0] sm:$0xff] %v2940_v7 }
 0x3c5   : >> { %2943 = vst [vmem:[%s3584_s15 + $0xc8] sm:$0xff] %v2942_v8 }
 0x3c6   : >> { %2945 = vst [vmem:[%s3584_s15 + $0xd0] sm:$0xff] %v2944_v9 }
 0x3c7   : >> { %2947 = vst [vmem:[%s3584_s15 + $0xd8] sm:$0xff] %v2946_v10  ;;  %2888 = sbr.rel (!%p2885_p12) target bundleno = 939 (0x3ab), region = 122 }
 0x3c8   : >> { %2949 = vst [vmem:[%s3584_s15 + $0xe0] sm:$0xff] %v2948_v11 }
 0x3c9   : >> { %2951 = vst [vmem:[%s3584_s15 + $0xe8] sm:$0xff] %v2950_v12 }
 0x3ca   : >> { %2953 = vst [vmem:[%s3584_s15 + $0xf0] sm:$0xff] %v2952_v13 }
 0x3cb   : >> { %2955 = vst [vmem:[%s3584_s15 + $0xf8] sm:$0xff] %v2954_v14  ;;  %s4646_s15 = smov %s4556_s17 }
 0x3cc PF: > { %s4621_s18 = sand.u32 31, %s4653_s29   ;;  %s3425_s21 = sshll.u32 %s4510_s8, 8 }
 0x3cd   : > { %s2967_s22 = scalar_lea.vmem %s3870_s12, %s3425_s21 [#allocation2]   ;;  %s2969_s23 = scalar_lea.vmem %s4504_s6, %s3425_s21  }
 0x3ce   : > { %p3419_p13 = scmp.le.s32.totalorder %s4621_s18, 0 }
 0x3cf   : > { %s3598_s24 = smov (!%p3419_p13), %s2969_s23   ;;  %s3602_s26 = smov (!%p3419_p13), %s2967_s22  }
 0x3d0   : > { %3060 = sbr.rel (%p3419_p13) target bundleno = 989 (0x3dd), region = 127  ;;  %s3606_s27 = smov (!%p3419_p13), 0  }
 0x3d1   : > { %s3610_s28 = smov (!%p3419_p13), 0  }
 0x3d5 LB: >> { %v2979_v15 = vld [vmem:[%s3604_s26] sm:$0xff]  ;;  %s2981_s29 = sadd.s32 1, %s3608_s27  ;;  %s2973_s28 = sadd.s32 1, %s3612_s28   ;;  %s3612_s28 = sphi %s3610_s28, %s2973_s28   ;;  %s3608_s27 = sphi %s3606_s27, %s3607_s27   ;;  %s3604_s26 = sphi %s3602_s26, %s2986_s26   ;;  %s3600_s24 = sphi %s3598_s24, %s2987_s24  }
 0x3d6   : >> { %2980 = vst [vmem:[%s3600_s24] sm:$0xff] %v2979_v15  ;;  %p2982_p0 = scmp.ge.s32.totalorder %s2981_s29, %s4621_s18  ;;  %p2972_p1 = scmp.ge.s32.totalorder %s2973_s28, %s4621_s18 }
 0x3d8   : >> { %s4657_s29 = smov (%p2982_p0, %s2981_s29), 0  ;;  %2975 = sbr.rel (!%p2972_p1) target bundleno = 981 (0x3d5), region = 133 }
 0x3d9   : >> { %s3420_s12 = sshll.u32 %s4657_s29, 3  ;;  %s3607_s27 = smov %s4657_s29  }
 0x3da   : >> { %s2986_s26 = scalar_lea.vmem %s2967_s22, %s3420_s12 [#allocation2]   ;;  %s2987_s24 = scalar_lea.vmem %s2969_s23, %s3420_s12  }
 0x3dd PF: > { %p10_p2 = scmp.ge.s32.totalorder %s3649_s16, 6   ;;  %s4649_s12 = smov %s3576_s13 }
 0x3de   : > { %s4650_s13 = smov %s3657_s19  ;;  %s4651_s14 = smov %s3649_s16 }
 0x3df   :  { %12 = sbr.rel (!%p10_p2) target bundleno = 2 (0x2), region = 144 }

</bundles_post_ra>
